<compile_context>
chip_gen: v7x
topology: tpu7x:2x2x1
jax: 0.10.0
libtpu: 0.0.40
codegen_flags: <defaults>
</compile_context>

<pallas_src>
from functools import partial

import jax
import jax.numpy as jnp
from jax import lax
from jax.experimental import pallas as pl
from jax.experimental.pallas import tpu as pltpu


# ---------------------------------------------------------------- helpers

def _round_up(x, m):
    return ((x + m - 1) // m) * m


def _vmem_capacity_bytes():
    try:
        info = pltpu.get_tpu_info()
        for name in ("vmem_capacity_bytes", "vmem_size_bytes", "vmem_bytes"):
            v = getattr(info, name, None)
            if isinstance(v, (int, float)) and v > 0:
                return int(v)
    except Exception:
        pass
    return 128 * 1024 * 1024  # v5e/v6e physical VMEM


def _plan_tiles(B, S, D, kmax, stream_itemsize):
    """Pick the batch tile size tb from a VMEM budget and return the budget."""
    vmem_cap = _vmem_capacity_bytes()
    budget = max(32 << 20, min(vmem_cap * 3 // 4, 100 << 20))
    # grid-invariant weight stacks (double-buffered by the pipeline), f32
    weights = 4 * (2 * D * 2 * D + 4 * D * kmax + 4 * kmax + 4 * kmax * D)
    # per-document streamed bytes (double-buffered): e1 + e2 + nsum1 + nsum2 + out
    streamed = stream_itemsize * (2 * S * D + 2 * D) + 4
    # per-document in-kernel f32 temporaries (upper bound): f32 copy of one
    # (S, D) block for the mean, d/aw (2, S), doc (2, D), dt scratch, rec/mixes
    temps = 4 * (S * D + 4 * S + 10 * D)
    avail = max(budget - 2 * weights - (4 << 20), 1 << 20)
    tb_cap = max(8, min((avail // (2 * streamed + temps)) // 8 * 8, 1024))

    b_pad = _round_up(B, 8)
    if b_pad <= tb_cap:
        if B >= 32:
            tb = _round_up((B + 1) // 2, 8)   # >=2 tiles -> megacore-friendly
        else:
            tb = b_pad                        # tiny batch: no over-padding
    else:
        tb = tb_cap
    num_tiles = -(-B // tb)
    return tb, num_tiles, budget


def _softmax_last(x):
    m = jnp.max(x, axis=-1, keepdims=True)
    e = jnp.exp(x - m)
    s = jnp.sum(e, axis=-1, keepdims=True)
    return e * pl.reciprocal(s, approx=True)   # EUP slot, not a VALU divide


# ---------------------------------------------------------------- kernel body

def jae_abae_kernel(lambda1, lambda2, n_neg,
                    e1_ref, e2_ref, n1_ref, n2_ref,
                    Mt_ref, Wt_ref, b_ref, Tt_ref,
                    out_ref, dt_buf):
    f32 = jnp.float32
    D = e1_ref.shape[-1]

    def side(e_ref, n_ref, pair, lam):
        e = e_ref[...]                                    # (TB, S, D) stream dtype
        cdt = e.dtype
        # document mean (f32 accumulation), shared by both branches of the pair
        y = jnp.mean(e.astype(f32), axis=1)               # (TB, D)

        # both attention projections with one stacked MXU matmul:
        #   dt_flat = y @ [M_p^T | M_s^T]  -> (TB, 2D)
        dt_flat = lax.dot_general(y, Mt_ref[pair], (((1,), (0,)), ((), ())),
                                  preferred_element_type=f32)
        dt_buf[:, 0, :] = dt_flat[:, :D].astype(cdt)      # private branch query
        dt_buf[:, 1, :] = dt_flat[:, D:].astype(cdt)      # shared  branch query
        dt_pair = dt_buf[...]                             # (TB, 2, D)

        # attention logits + softmax + doc embeddings for BOTH branches in a
        # single pass over e (batched MXU matmuls, f32 accumulation).
        d = jnp.einsum('bkd,bsd->bks', dt_pair, e,
                       preferred_element_type=f32)        # (TB, 2, S)
        aw = _softmax_last(d).astype(cdt)                 # (TB, 2, S)
        doc = jnp.einsum('bks,bsd->bkd', aw, e,
                         preferred_element_type=f32)      # (TB, 2, D)

        # per-branch topic distribution + reconstruction (small f32 matmuls;
        # weights are pre-transposed -> contraction on the RHS leading dim)
        def topic(j):
            g = 2 * pair + j
            dj = doc[:, j, :]                                             # (TB, D)
            red = lax.dot_general(dj, Wt_ref[g], (((1,), (0,)), ((), ())),
                                  preferred_element_type=f32) + b_ref[g]  # (TB, Kmax)
            p = _softmax_last(red)                                        # padded topics -> 0
            return lax.dot_general(p, Tt_ref[g], (((1,), (0,)), ((), ())),
                                   preferred_element_type=f32)            # (TB, D)

        rec_p, rec_s = topic(0), topic(1)
        doc_mix = (1.0 - lam) * doc[:, 0, :] + lam * doc[:, 1, :]
        rec_mix = (1.0 - lam) * rec_p + lam * rec_s

        # hinge loss; negatives pre-summed over N in the wrapper (exact: the
        # hinge is applied after the sum over negatives in the original model)
        nsum = n_ref[...].astype(f32)                     # (TB, D)
        rz = jnp.sum(doc_mix * rec_mix, axis=-1)          # (TB,)
        rn = jnp.sum(nsum * rec_mix, axis=-1)             # (TB,)
        return jnp.maximum(n_neg * (1.0 - rz) + rn, 0.0)

    total = side(e1_ref, n1_ref, 0, lambda1) + side(e2_ref, n2_ref, 1, lambda2)
    out_ref[...] = total[None, :].astype(out_ref.dtype)   # lane-dense (1, TB)


# ---------------------------------------------------------------- wrapper

def jae_abae_forward(e1, e2, neg1, neg2, params, lambda1, lambda2, ortho_reg,
                     *, stream_dtype=jnp.bfloat16, tb=None):
    B, S, D = e1.shape
    _, N, Sn, _ = neg1.shape
    (Mp1, Ms1, Mp2, Ms2,
     Wp1, bp1, Ws1, bs1, Wp2, bp2, Ws2, bs2,
     Tp1, Tp2, Ts12) = params

    f32 = jnp.float32
    sdt = jnp.dtype(stream_dtype)
    kmax = max(128, _round_up(max(Wp1.shape[0], Ws1.shape[0],
                                  Wp2.shape[0], Ws2.shape[0]), 128))

    # ---- hoisted prep (wrapper-side, plain XLA) ----------------------------
    # negatives: mean over Sn (as in the torch model), then SUM over N.
    # Exact because the hinge is applied after the sum over negatives.
    nsum1 = jnp.sum(jnp.mean(neg1.astype(f32), axis=2), axis=1)   # (B, D)
    nsum2 = jnp.sum(jnp.mean(neg2.astype(f32), axis=2), axis=1)   # (B, D)

    # VMEM-budgeted tile size + compiler VMEM limit
    if tb is None:
        tb, num_tiles, vmem_budget = _plan_tiles(B, S, D, kmax, sdt.itemsize)
    else:
        tb = max(8, _round_up(int(tb), 8))
        num_tiles = -(-B // tb)
        vmem_budget = _plan_tiles(B, S, D, kmax, sdt.itemsize)[2]
    Bpad = num_tiles * tb

    def pad_b(x):
        pad = Bpad - x.shape[0]
        return x if pad == 0 else jnp.pad(x, ((0, pad),) + ((0, 0),) * (x.ndim - 1))

    # streamed tensors in the (narrow) stream dtype
    e1p = pad_b(e1.astype(sdt))
    e2p = pad_b(e2.astype(sdt))
    n1p = pad_b(nsum1.astype(sdt))
    n2p = pad_b(nsum2.astype(sdt))

    # weight stacks: pre-transposed, lane-padded to kmax, kept f32
    NEG = -1e30   # bias pad -> padded topics softmax to exactly 0 (f32 only!)

    def padWt(w):   # (K, D) -> W^T padded to (D, kmax)
        return jnp.pad(w.T.astype(f32), ((0, 0), (0, kmax - w.shape[0])))

    def padb(b):    # (1, K) -> (1, kmax)
        return jnp.pad(b.astype(f32), ((0, 0), (0, kmax - b.shape[1])),
                       constant_values=NEG)

    def padTt(t):   # (D, K) -> T^T padded to (kmax, D)
        return jnp.pad(t.T.astype(f32), ((0, kmax - t.shape[1]), (0, 0)))

    Mt_stack = jnp.stack([jnp.concatenate([Mp1.T, Ms1.T], axis=1),
                          jnp.concatenate([Mp2.T, Ms2.T], axis=1)]).astype(f32)  # (2,D,2D)
    Wt_stack = jnp.stack([padWt(Wp1), padWt(Ws1), padWt(Wp2), padWt(Ws2)])       # (4,D,Kmax)
    b_stack = jnp.stack([padb(bp1), padb(bs1), padb(bp2), padb(bs2)])            # (4,1,Kmax)
    Tt_stack = jnp.stack([padTt(Tp1), padTt(Ts12), padTt(Tp2), padTt(Ts12)])     # (4,Kmax,D)

    in_specs = [
        pl.BlockSpec((tb, S, D), lambda b: (b, 0, 0)),       # e1
        pl.BlockSpec((tb, S, D), lambda b: (b, 0, 0)),       # e2
        pl.BlockSpec((tb, D), lambda b: (b, 0)),             # neg sum 1
        pl.BlockSpec((tb, D), lambda b: (b, 0)),             # neg sum 2
        pl.BlockSpec((2, D, 2 * D), lambda b: (0, 0, 0)),    # [Mp^T | Ms^T] per side
        pl.BlockSpec((4, D, kmax), lambda b: (0, 0, 0)),     # W^T stack
        pl.BlockSpec((4, 1, kmax), lambda b: (0, 0, 0)),     # bias stack (f32)
        pl.BlockSpec((4, kmax, D), lambda b: (0, 0, 0)),     # T^T stack
    ]

    out = pl.pallas_call(
        partial(jae_abae_kernel, float(lambda1), float(lambda2), float(N)),
        out_shape=jax.ShapeDtypeStruct((num_tiles, tb), jnp.float32),
        grid_spec=pltpu.PrefetchScalarGridSpec(
            num_scalar_prefetch=0,
            grid=(num_tiles,),
            in_specs=in_specs,
            out_specs=pl.BlockSpec((1, tb), lambda b: (b, 0)),
            scratch_shapes=[pltpu.VMEM((tb, 2, D), sdt)],    # stacked attn queries
        ),
        compiler_params=pltpu.CompilerParams(
            dimension_semantics=("parallel",),
            vmem_limit_bytes=int(vmem_budget),
        ),
    )(e1p, e2p, n1p, n2p, Mt_stack, Wt_stack, b_stack, Tt_stack)

    recon = out.reshape(Bpad)[:B].reshape(B, 1)

    # batch-invariant orthogonality regularizer, computed once (plain XLA)
    def ortho(T):
        K = T.shape[1]
        Tf = T.astype(f32)
        return jnp.linalg.norm(Tf.T @ Tf - jnp.eye(K, dtype=f32))

    reg = ortho(Tp1) + ortho(Tp2) + ortho(Ts12)
    return recon + jnp.float32(ortho_reg) * reg


# ---------------------------------------------------------------- reference

def jae_abae_reference(e1, e2, neg1, neg2, params, lambda1, lambda2, ortho_reg):
    (Mp1, Ms1, Mp2, Ms2,
     Wp1, bp1, Ws1, bs1, Wp2, bp2, Ws2, bs2,
     Tp1, Tp2, Ts12) = params

    def branch(e, M, W, b, T):
        y = jnp.mean(e, axis=1)
        d_temp = jnp.einsum('ij,bj->bi', M, y)
        d = jnp.einsum('bsd,bd->bs', e, d_temp)
        aw = jax.nn.softmax(d, axis=-1)
        doc = jnp.einsum('bs,bsd->bd', aw, e)
        p = jax.nn.softmax(doc @ W.T + b, axis=-1)
        rec = jnp.einsum('dk,bk->bd', T, p)
        return doc, rec

    def recon(doc, rec, neg_mean):
        rz = jnp.sum(doc * rec, axis=-1)
        rn = jnp.einsum('bnd,bd->bn', neg_mean, rec)
        loss = jnp.sum(1.0 - rz[:, None] + rn, axis=1)
        return jnp.maximum(loss, 0.0)[:, None]

    def ortho(T):
        K = T.shape[1]
        return jnp.linalg.norm(T.T @ T - jnp.eye(K, dtype=T.dtype))

    n1m = jnp.mean(neg1, axis=2)
    n2m = jnp.mean(neg2, axis=2)
    de_p1, dr_p1 = branch(e1, Mp1, Wp1, bp1, Tp1)
    de_s1, dr_s1 = branch(e1, Ms1, Ws1, bs1, Ts12)
    de_p2, dr_p2 = branch(e2, Mp2, Wp2, bp2, Tp2)
    de_s2, dr_s2 = branch(e2, Ms2, Ws2, bs2, Ts12)
    d1 = (1 - lambda1) * de_p1 + lambda1 * de_s1
    d2 = (1 - lambda2) * de_p2 + lambda2 * de_s2
    r1 = (1 - lambda1) * dr_p1 + lambda1 * dr_s1
    r2 = (1 - lambda2) * dr_p2 + lambda2 * dr_s2
    reg = ortho(Tp1) + ortho(Tp2) + ortho(Ts12)
    return recon(d1, r1, n1m) + recon(d2, r2, n2m) + ortho_reg * reg


# ---------------------------------------------------------------- main

if __name__ == "__main__":
    # small deterministic config
    B, S, D = 2, 8, 32           # batch, seq, emb_dim
    N, Sn = 3, 4                 # negative samples per doc, neg seq len
    K1, K2, Ks = 5, 6, 4         # private1 / private2 / shared topic counts
    VOCAB = 50
    lambda1, lambda2, ortho_reg = 0.3, 0.6, 0.1

    key = jax.random.PRNGKey(0)
    ks = jax.random.split(key, 24)

    word_emb = jax.random.normal(ks[0], (VOCAB, D), jnp.float32)
    idx1 = jax.random.randint(ks[1], (B, S), 0, VOCAB)
    idx2 = jax.random.randint(ks[2], (B, S), 0, VOCAB)
    nidx1 = jax.random.randint(ks[3], (B, N, Sn), 0, VOCAB)
    nidx2 = jax.random.randint(ks[4], (B, N, Sn), 0, VOCAB)

    # glue: embedding lookup (torch nn.Embedding.from_pretrained, frozen)
    e1 = jnp.take(word_emb, idx1, axis=0)            # (B,S,D)
    e2 = jnp.take(word_emb, idx2, axis=0)            # (B,S,D)
    neg1 = jnp.take(word_emb, nidx1, axis=0)         # (B,N,Sn,D)
    neg2 = jnp.take(word_emb, nidx2, axis=0)         # (B,N,Sn,D)

    # deterministic parameter init (same shapes as the torch module)
    def unif(k, shape, scale):
        return jax.random.uniform(k, shape, jnp.float32, -scale, scale)

    Mp1 = unif(ks[5], (D, D), (6.0 / D) ** 0.5)
    Ms1 = unif(ks[6], (D, D), (6.0 / D) ** 0.5)
    Mp2 = unif(ks[7], (D, D), (6.0 / D) ** 0.5)
    Ms2 = unif(ks[8], (D, D), (6.0 / D) ** 0.5)

    Wp1 = unif(ks[9], (K1, D), (1.0 / D) ** 0.5); bp1 = unif(ks[10], (1, K1), (1.0 / D) ** 0.5)
    Ws1 = unif(ks[11], (Ks, D), (1.0 / D) ** 0.5); bs1 = unif(ks[12], (1, Ks), (1.0 / D) ** 0.5)
    Wp2 = unif(ks[13], (K2, D), (1.0 / D) ** 0.5); bp2 = unif(ks[14], (1, K2), (1.0 / D) ** 0.5)
    Ws2 = unif(ks[15], (Ks, D), (1.0 / D) ** 0.5); bs2 = unif(ks[16], (1, Ks), (1.0 / D) ** 0.5)

    Tp1 = unif(ks[17], (D, K1), (6.0 / (D + K1)) ** 0.5)   # xavier uniform
    Tp2 = unif(ks[18], (D, K2), (6.0 / (D + K2)) ** 0.5)
    Ts12 = unif(ks[19], (D, Ks), (6.0 / (D + Ks)) ** 0.5)

    params = (Mp1, Ms1, Mp2, Ms2,
              Wp1, bp1, Ws1, bs1, Wp2, bp2, Ws2, bs2,
              Tp1, Tp2, Ts12)

    ref = jae_abae_reference(e1, e2, neg1, neg2, params, lambda1, lambda2, ortho_reg)

    # 1) strict check with f32 streaming (tolerance covers approx reciprocal)
    out32 = jae_abae_forward(e1, e2, neg1, neg2, params, lambda1, lambda2,
                             ortho_reg, stream_dtype=jnp.float32)
    out32 = jax.block_until_ready(out32)
    assert out32.shape == (B, 1)
    assert jnp.allclose(out32, ref, rtol=1e-2, atol=1e-2), (out32, ref)

    # 2) default (bf16-streamed) fast path
    outbf = jae_abae_forward(e1, e2, neg1, neg2, params, lambda1, lambda2,
                             ortho_reg)
    outbf = jax.block_until_ready(outbf)
    assert outbf.shape == (B, 1)
    assert bool(jnp.all(jnp.isfinite(outbf)))
    assert jnp.allclose(outbf, ref, rtol=5e-2, atol=5e-2), (outbf, ref)

    print("KERNEL_OK")
</pallas_src>

<mosaic_0001>
module attributes {stable_mosaic.version = 11 : i64} {
  func.func @jae_abae_kernel(%arg0: i32, %arg1: memref<8x8x32xf32, #tpu.memory_space<vmem>>, %arg2: memref<8x8x32xf32, #tpu.memory_space<vmem>>, %arg3: memref<8x32xf32, #tpu.memory_space<vmem>>, %arg4: memref<8x32xf32, #tpu.memory_space<vmem>>, %arg5: memref<2x32x64xf32, #tpu.memory_space<vmem>>, %arg6: memref<4x32x128xf32, #tpu.memory_space<vmem>>, %arg7: memref<4x1x128xf32, #tpu.memory_space<vmem>>, %arg8: memref<4x128x32xf32, #tpu.memory_space<vmem>>, %arg9: memref<1x8xf32, #tpu.memory_space<vmem>>, %arg10: memref<8x2x32xf32, #tpu.memory_space<vmem>>) attributes {dimension_semantics = [#tpu.dimension_semantics<parallel>], iteration_bounds = array<i64: 1>, scalar_prefetch = 0 : i64, scratch_operands = 1 : i64, tpu.core_type = #tpu.core_type<tc>, window_params = [{transform_indices = @transform_0, window_bounds = array<i64: 8, 8, 32>}, {transform_indices = @transform_1, window_bounds = array<i64: 8, 8, 32>}, {transform_indices = @transform_2, window_bounds = array<i64: 8, 32>}, {transform_indices = @transform_3, window_bounds = array<i64: 8, 32>}, {pipeline_mode = #tpu.pipeline_mode<synchronous>, transform_indices = @transform_4, window_bounds = array<i64: 2, 32, 64>}, {pipeline_mode = #tpu.pipeline_mode<synchronous>, transform_indices = @transform_5, window_bounds = array<i64: 4, 32, 128>}, {pipeline_mode = #tpu.pipeline_mode<synchronous>, transform_indices = @transform_6, window_bounds = array<i64: 4, 1, 128>}, {pipeline_mode = #tpu.pipeline_mode<synchronous>, transform_indices = @transform_7, window_bounds = array<i64: 4, 128, 32>}, {transform_indices = @transform_8, window_bounds = array<i64: 1, 8>}]} {
    %c0 = arith.constant 0 : index
    %c0_0 = arith.constant 0 : index
    %c0_1 = arith.constant 0 : index
    %0 = vector.load %arg1[%c0, %c0_0, %c0_1] : memref<8x8x32xf32, #tpu.memory_space<vmem>>, vector<8x8x32xf32>
    %cst = arith.constant dense<0.000000e+00> : vector<8x32xf32>
    %1 = vector.multi_reduction <add>, %0, %cst [1] : vector<8x8x32xf32> to vector<8x32xf32>
    %cst_2 = arith.constant 8.000000e+00 : f32
    %2 = vector.broadcast %cst_2 : f32 to vector<8x32xf32>
    %3 = arith.divf %1, %2 : vector<8x32xf32>
    %c0_3 = arith.constant 0 : index
    %c0_4 = arith.constant 0 : index
    %c0_5 = arith.constant 0 : index
    %4 = vector.load %arg5[%c0_3, %c0_4, %c0_5] : memref<2x32x64xf32, #tpu.memory_space<vmem>>, vector<1x32x64xf32>
    %5 = vector.shape_cast %4 : vector<1x32x64xf32> to vector<32x64xf32>
    %cst_6 = arith.constant dense<0.000000e+00> : vector<8x64xf32>
    %6 = tpu.matmul %3, %5, %cst_6 {dimension_numbers = #tpu.dot_dimension_numbers<[1], [0], [0], [1], [0, 0, 1, 1], [], []>} : vector<8x32xf32>, vector<32x64xf32>, vector<8x64xf32> -> vector<8x64xf32>
    %7 = vector.extract_strided_slice %6 {offsets = [0, 0], sizes = [8, 32], strides = [1, 1]} : vector<8x64xf32> to vector<8x32xf32>
    %c0_7 = arith.constant 0 : index
    %c0_8 = arith.constant 0 : index
    %c0_9 = arith.constant 0 : index
    %8 = vector.load %arg10[%c0_7, %c0_8, %c0_9] : memref<8x2x32xf32, #tpu.memory_space<vmem>>, vector<8x1x32xf32>
    %9 = vector.shape_cast %8 : vector<8x1x32xf32> to vector<8x32xf32>
    %10 = vector.shape_cast %7 : vector<8x32xf32> to vector<8x1x32xf32>
    tpu.vector_store %arg10[%c0_7, %c0_8, %c0_9], %10 {strides = array<i32>} : memref<8x2x32xf32, #tpu.memory_space<vmem>>, vector<8x1x32xf32>,
    %11 = vector.extract_strided_slice %6 {offsets = [0, 32], sizes = [8, 32], strides = [1, 1]} : vector<8x64xf32> to vector<8x32xf32>
    %c0_10 = arith.constant 0 : index
    %c1 = arith.constant 1 : index
    %c0_11 = arith.constant 0 : index
    %12 = vector.load %arg10[%c0_10, %c1, %c0_11] : memref<8x2x32xf32, #tpu.memory_space<vmem>>, vector<8x1x32xf32>
    %13 = vector.shape_cast %12 : vector<8x1x32xf32> to vector<8x32xf32>
    %14 = vector.shape_cast %11 : vector<8x32xf32> to vector<8x1x32xf32>
    tpu.vector_store %arg10[%c0_10, %c1, %c0_11], %14 {strides = array<i32>} : memref<8x2x32xf32, #tpu.memory_space<vmem>>, vector<8x1x32xf32>,
    %c0_12 = arith.constant 0 : index
    %c0_13 = arith.constant 0 : index
    %c0_14 = arith.constant 0 : index
    %15 = vector.load %arg10[%c0_12, %c0_13, %c0_14] : memref<8x2x32xf32, #tpu.memory_space<vmem>>, vector<8x2x32xf32>
    "tpu.trace_start"() <{level = 10 : i32, message = "bkd,bsd->bks"}> : () -> ()
    %cst_15 = arith.constant dense<0.000000e+00> : vector<8x2x8xf32>
    %16 = tpu.matmul %15, %0, %cst_15 {dimension_numbers = #tpu.dot_dimension_numbers<[2], [2], [1], [1], [0, 0, 0, 1, 1, 1], [0], [0]>} : vector<8x2x32xf32>, vector<8x8x32xf32>, vector<8x2x8xf32> -> vector<8x2x8xf32>
    "tpu.trace_stop"() : () -> ()
    %cst_16 = arith.constant dense<0xFF800000> : vector<8x2xf32>
    %17 = vector.multi_reduction <maximumf>, %16, %cst_16 [2] : vector<8x2x8xf32> to vector<8x2xf32>
    %18 = vector.shape_cast %17 : vector<8x2xf32> to vector<8x2x1xf32>
    %19 = vector.broadcast %18 : vector<8x2x1xf32> to vector<8x2x8xf32>
    %20 = arith.subf %16, %19 : vector<8x2x8xf32>
    %21 = math.exp %20 : vector<8x2x8xf32>
    %cst_17 = arith.constant dense<0.000000e+00> : vector<8x2xf32>
    %22 = vector.multi_reduction <add>, %21, %cst_17 [2] : vector<8x2x8xf32> to vector<8x2xf32>
    %23 = vector.shape_cast %22 : vector<8x2xf32> to vector<8x2x1xf32>
    %24 = tpu.reciprocal %23 {approx = true} : vector<8x2x1xf32> -> vector<8x2x1xf32>
    %25 = vector.broadcast %24 : vector<8x2x1xf32> to vector<8x2x8xf32>
    %26 = arith.mulf %21, %25 : vector<8x2x8xf32>
    "tpu.trace_start"() <{level = 10 : i32, message = "bks,bsd->bkd"}> : () -> ()
    %cst_18 = arith.constant dense<0.000000e+00> : vector<8x2x32xf32>
    %27 = tpu.matmul %26, %0, %cst_18 {dimension_numbers = #tpu.dot_dimension_numbers<[2], [1], [1], [2], [0, 0, 0, 1, 1, 2], [0], [0]>} : vector<8x2x8xf32>, vector<8x8x32xf32>, vector<8x2x32xf32> -> vector<8x2x32xf32>
    "tpu.trace_stop"() : () -> ()
    %28 = vector.extract_strided_slice %27 {offsets = [0, 0, 0], sizes = [8, 1, 32], strides = [1, 1, 1]} : vector<8x2x32xf32> to vector<8x1x32xf32>
    %29 = vector.shape_cast %28 : vector<8x1x32xf32> to vector<8x32xf32>
    %c0_19 = arith.constant 0 : index
    %c0_20 = arith.constant 0 : index
    %c0_21 = arith.constant 0 : index
    %30 = vector.load %arg6[%c0_19, %c0_20, %c0_21] : memref<4x32x128xf32, #tpu.memory_space<vmem>>, vector<1x32x128xf32>
    %31 = vector.shape_cast %30 : vector<1x32x128xf32> to vector<32x128xf32>
    %cst_22 = arith.constant dense<0.000000e+00> : vector<8x128xf32>
    %32 = tpu.matmul %29, %31, %cst_22 {dimension_numbers = #tpu.dot_dimension_numbers<[1], [0], [0], [1], [0, 0, 1, 1], [], []>} : vector<8x32xf32>, vector<32x128xf32>, vector<8x128xf32> -> vector<8x128xf32>
    %c0_23 = arith.constant 0 : index
    %c0_24 = arith.constant 0 : index
    %c0_25 = arith.constant 0 : index
    %33 = vector.load %arg7[%c0_23, %c0_24, %c0_25] : memref<4x1x128xf32, #tpu.memory_space<vmem>>, vector<1x1x128xf32>
    %34 = vector.shape_cast %33 : vector<1x1x128xf32> to vector<1x128xf32>
    %35 = vector.broadcast %34 : vector<1x128xf32> to vector<8x128xf32>
    %36 = arith.addf %32, %35 : vector<8x128xf32>
    %cst_26 = arith.constant dense<0xFF800000> : vector<8xf32>
    %37 = vector.multi_reduction <maximumf>, %36, %cst_26 [1] : vector<8x128xf32> to vector<8xf32>
    %38 = vector.shape_cast %37 : vector<8xf32> to vector<8x1xf32>
    %39 = vector.broadcast %38 : vector<8x1xf32> to vector<8x128xf32>
    %40 = arith.subf %36, %39 : vector<8x128xf32>
    %41 = math.exp %40 : vector<8x128xf32>
    %cst_27 = arith.constant dense<0.000000e+00> : vector<8xf32>
    %42 = vector.multi_reduction <add>, %41, %cst_27 [1] : vector<8x128xf32> to vector<8xf32>
    %43 = vector.shape_cast %42 : vector<8xf32> to vector<8x1xf32>
    %44 = tpu.reciprocal %43 {approx = true} : vector<8x1xf32> -> vector<8x1xf32>
    %45 = vector.broadcast %44 : vector<8x1xf32> to vector<8x128xf32>
    %46 = arith.mulf %41, %45 : vector<8x128xf32>
    %c0_28 = arith.constant 0 : index
    %c0_29 = arith.constant 0 : index
    %c0_30 = arith.constant 0 : index
    %47 = vector.load %arg8[%c0_28, %c0_29, %c0_30] : memref<4x128x32xf32, #tpu.memory_space<vmem>>, vector<1x128x32xf32>
    %48 = vector.shape_cast %47 : vector<1x128x32xf32> to vector<128x32xf32>
    %cst_31 = arith.constant dense<0.000000e+00> : vector<8x32xf32>
    %49 = tpu.matmul %46, %48, %cst_31 {dimension_numbers = #tpu.dot_dimension_numbers<[1], [0], [0], [1], [0, 0, 1, 1], [], []>} : vector<8x128xf32>, vector<128x32xf32>, vector<8x32xf32> -> vector<8x32xf32>
    %50 = vector.extract_strided_slice %27 {offsets = [0, 1, 0], sizes = [8, 1, 32], strides = [1, 1, 1]} : vector<8x2x32xf32> to vector<8x1x32xf32>
    %51 = vector.shape_cast %50 : vector<8x1x32xf32> to vector<8x32xf32>
    %c1_32 = arith.constant 1 : index
    %c0_33 = arith.constant 0 : index
    %c0_34 = arith.constant 0 : index
    %52 = vector.load %arg6[%c1_32, %c0_33, %c0_34] : memref<4x32x128xf32, #tpu.memory_space<vmem>>, vector<1x32x128xf32>
    %53 = vector.shape_cast %52 : vector<1x32x128xf32> to vector<32x128xf32>
    %cst_35 = arith.constant dense<0.000000e+00> : vector<8x128xf32>
    %54 = tpu.matmul %51, %53, %cst_35 {dimension_numbers = #tpu.dot_dimension_numbers<[1], [0], [0], [1], [0, 0, 1, 1], [], []>} : vector<8x32xf32>, vector<32x128xf32>, vector<8x128xf32> -> vector<8x128xf32>
    %c1_36 = arith.constant 1 : index
    %c0_37 = arith.constant 0 : index
    %c0_38 = arith.constant 0 : index
    %55 = vector.load %arg7[%c1_36, %c0_37, %c0_38] : memref<4x1x128xf32, #tpu.memory_space<vmem>>, vector<1x1x128xf32>
    %56 = vector.shape_cast %55 : vector<1x1x128xf32> to vector<1x128xf32>
    %57 = vector.broadcast %56 : vector<1x128xf32> to vector<8x128xf32>
    %58 = arith.addf %54, %57 : vector<8x128xf32>
    %cst_39 = arith.constant dense<0xFF800000> : vector<8xf32>
    %59 = vector.multi_reduction <maximumf>, %58, %cst_39 [1] : vector<8x128xf32> to vector<8xf32>
    %60 = vector.shape_cast %59 : vector<8xf32> to vector<8x1xf32>
    %61 = vector.broadcast %60 : vector<8x1xf32> to vector<8x128xf32>
    %62 = arith.subf %58, %61 : vector<8x128xf32>
    %63 = math.exp %62 : vector<8x128xf32>
    %cst_40 = arith.constant dense<0.000000e+00> : vector<8xf32>
    %64 = vector.multi_reduction <add>, %63, %cst_40 [1] : vector<8x128xf32> to vector<8xf32>
    %65 = vector.shape_cast %64 : vector<8xf32> to vector<8x1xf32>
    %66 = tpu.reciprocal %65 {approx = true} : vector<8x1xf32> -> vector<8x1xf32>
    %67 = vector.broadcast %66 : vector<8x1xf32> to vector<8x128xf32>
    %68 = arith.mulf %63, %67 : vector<8x128xf32>
    %c1_41 = arith.constant 1 : index
    %c0_42 = arith.constant 0 : index
    %c0_43 = arith.constant 0 : index
    %69 = vector.load %arg8[%c1_41, %c0_42, %c0_43] : memref<4x128x32xf32, #tpu.memory_space<vmem>>, vector<1x128x32xf32>
    %70 = vector.shape_cast %69 : vector<1x128x32xf32> to vector<128x32xf32>
    %cst_44 = arith.constant dense<0.000000e+00> : vector<8x32xf32>
    %71 = tpu.matmul %68, %70, %cst_44 {dimension_numbers = #tpu.dot_dimension_numbers<[1], [0], [0], [1], [0, 0, 1, 1], [], []>} : vector<8x128xf32>, vector<128x32xf32>, vector<8x32xf32> -> vector<8x32xf32>
    %72 = vector.extract_strided_slice %27 {offsets = [0, 0, 0], sizes = [8, 1, 32], strides = [1, 1, 1]} : vector<8x2x32xf32> to vector<8x1x32xf32>
    %73 = vector.shape_cast %72 : vector<8x1x32xf32> to vector<8x32xf32>
    %cst_45 = arith.constant 0.699999988 : f32
    %74 = vector.broadcast %cst_45 : f32 to vector<8x32xf32>
    %75 = arith.mulf %74, %73 : vector<8x32xf32>
    %76 = vector.extract_strided_slice %27 {offsets = [0, 1, 0], sizes = [8, 1, 32], strides = [1, 1, 1]} : vector<8x2x32xf32> to vector<8x1x32xf32>
    %77 = vector.shape_cast %76 : vector<8x1x32xf32> to vector<8x32xf32>
    %cst_46 = arith.constant 3.000000e-01 : f32
    %78 = vector.broadcast %cst_46 : f32 to vector<8x32xf32>
    %79 = arith.mulf %78, %77 : vector<8x32xf32>
    %80 = arith.addf %75, %79 : vector<8x32xf32>
    %cst_47 = arith.constant 0.699999988 : f32
    %81 = vector.broadcast %cst_47 : f32 to vector<8x32xf32>
    %82 = arith.mulf %81, %49 : vector<8x32xf32>
    %cst_48 = arith.constant 3.000000e-01 : f32
    %83 = vector.broadcast %cst_48 : f32 to vector<8x32xf32>
    %84 = arith.mulf %83, %71 : vector<8x32xf32>
    %85 = arith.addf %82, %84 : vector<8x32xf32>
    %c0_49 = arith.constant 0 : index
    %c0_50 = arith.constant 0 : index
    %86 = vector.load %arg3[%c0_49, %c0_50] : memref<8x32xf32, #tpu.memory_space<vmem>>, vector<8x32xf32>
    %87 = arith.mulf %80, %85 : vector<8x32xf32>
    %cst_51 = arith.constant dense<0.000000e+00> : vector<8xf32>
    %88 = vector.multi_reduction <add>, %87, %cst_51 [1] : vector<8x32xf32> to vector<8xf32>
    %89 = arith.mulf %86, %85 : vector<8x32xf32>
    %cst_52 = arith.constant dense<0.000000e+00> : vector<8xf32>
    %90 = vector.multi_reduction <add>, %89, %cst_52 [1] : vector<8x32xf32> to vector<8xf32>
    %cst_53 = arith.constant 1.000000e+00 : f32
    %91 = vector.broadcast %cst_53 : f32 to vector<8xf32>
    %92 = arith.subf %91, %88 : vector<8xf32>
    %cst_54 = arith.constant 3.000000e+00 : f32
    %93 = vector.broadcast %cst_54 : f32 to vector<8xf32>
    %94 = arith.mulf %93, %92 : vector<8xf32>
    %95 = arith.addf %94, %90 : vector<8xf32>
    %cst_55 = arith.constant 0.000000e+00 : f32
    %96 = vector.broadcast %cst_55 : f32 to vector<8xf32>
    %97 = arith.maximumf %95, %96 : vector<8xf32>
    %c0_56 = arith.constant 0 : index
    %c0_57 = arith.constant 0 : index
    %c0_58 = arith.constant 0 : index
    %98 = vector.load %arg2[%c0_56, %c0_57, %c0_58] : memref<8x8x32xf32, #tpu.memory_space<vmem>>, vector<8x8x32xf32>
    %cst_59 = arith.constant dense<0.000000e+00> : vector<8x32xf32>
    %99 = vector.multi_reduction <add>, %98, %cst_59 [1] : vector<8x8x32xf32> to vector<8x32xf32>
    %cst_60 = arith.constant 8.000000e+00 : f32
    %100 = vector.broadcast %cst_60 : f32 to vector<8x32xf32>
    %101 = arith.divf %99, %100 : vector<8x32xf32>
    %c1_61 = arith.constant 1 : index
    %c0_62 = arith.constant 0 : index
    %c0_63 = arith.constant 0 : index
    %102 = vector.load %arg5[%c1_61, %c0_62, %c0_63] : memref<2x32x64xf32, #tpu.memory_space<vmem>>, vector<1x32x64xf32>
    %103 = vector.shape_cast %102 : vector<1x32x64xf32> to vector<32x64xf32>
    %cst_64 = arith.constant dense<0.000000e+00> : vector<8x64xf32>
    %104 = tpu.matmul %101, %103, %cst_64 {dimension_numbers = #tpu.dot_dimension_numbers<[1], [0], [0], [1], [0, 0, 1, 1], [], []>} : vector<8x32xf32>, vector<32x64xf32>, vector<8x64xf32> -> vector<8x64xf32>
    %105 = vector.extract_strided_slice %104 {offsets = [0, 0], sizes = [8, 32], strides = [1, 1]} : vector<8x64xf32> to vector<8x32xf32>
    %c0_65 = arith.constant 0 : index
    %c0_66 = arith.constant 0 : index
    %c0_67 = arith.constant 0 : index
    %106 = vector.load %arg10[%c0_65, %c0_66, %c0_67] : memref<8x2x32xf32, #tpu.memory_space<vmem>>, vector<8x1x32xf32>
    %107 = vector.shape_cast %106 : vector<8x1x32xf32> to vector<8x32xf32>
    %108 = vector.shape_cast %105 : vector<8x32xf32> to vector<8x1x32xf32>
    tpu.vector_store %arg10[%c0_65, %c0_66, %c0_67], %108 {strides = array<i32>} : memref<8x2x32xf32, #tpu.memory_space<vmem>>, vector<8x1x32xf32>,
    %109 = vector.extract_strided_slice %104 {offsets = [0, 32], sizes = [8, 32], strides = [1, 1]} : vector<8x64xf32> to vector<8x32xf32>
    %c0_68 = arith.constant 0 : index
    %c1_69 = arith.constant 1 : index
    %c0_70 = arith.constant 0 : index
    %110 = vector.load %arg10[%c0_68, %c1_69, %c0_70] : memref<8x2x32xf32, #tpu.memory_space<vmem>>, vector<8x1x32xf32>
    %111 = vector.shape_cast %110 : vector<8x1x32xf32> to vector<8x32xf32>
    %112 = vector.shape_cast %109 : vector<8x32xf32> to vector<8x1x32xf32>
    tpu.vector_store %arg10[%c0_68, %c1_69, %c0_70], %112 {strides = array<i32>} : memref<8x2x32xf32, #tpu.memory_space<vmem>>, vector<8x1x32xf32>,
    %c0_71 = arith.constant 0 : index
    %c0_72 = arith.constant 0 : index
    %c0_73 = arith.constant 0 : index
    %113 = vector.load %arg10[%c0_71, %c0_72, %c0_73] : memref<8x2x32xf32, #tpu.memory_space<vmem>>, vector<8x2x32xf32>
    "tpu.trace_start"() <{level = 10 : i32, message = "bkd,bsd->bks"}> : () -> ()
    %cst_74 = arith.constant dense<0.000000e+00> : vector<8x2x8xf32>
    %114 = tpu.matmul %113, %98, %cst_74 {dimension_numbers = #tpu.dot_dimension_numbers<[2], [2], [1], [1], [0, 0, 0, 1, 1, 1], [0], [0]>} : vector<8x2x32xf32>, vector<8x8x32xf32>, vector<8x2x8xf32> -> vector<8x2x8xf32>
    "tpu.trace_stop"() : () -> ()
    %cst_75 = arith.constant dense<0xFF800000> : vector<8x2xf32>
    %115 = vector.multi_reduction <maximumf>, %114, %cst_75 [2] : vector<8x2x8xf32> to vector<8x2xf32>
    %116 = vector.shape_cast %115 : vector<8x2xf32> to vector<8x2x1xf32>
    %117 = vector.broadcast %116 : vector<8x2x1xf32> to vector<8x2x8xf32>
    %118 = arith.subf %114, %117 : vector<8x2x8xf32>
    %119 = math.exp %118 : vector<8x2x8xf32>
    %cst_76 = arith.constant dense<0.000000e+00> : vector<8x2xf32>
    %120 = vector.multi_reduction <add>, %119, %cst_76 [2] : vector<8x2x8xf32> to vector<8x2xf32>
    %121 = vector.shape_cast %120 : vector<8x2xf32> to vector<8x2x1xf32>
    %122 = tpu.reciprocal %121 {approx = true} : vector<8x2x1xf32> -> vector<8x2x1xf32>
    %123 = vector.broadcast %122 : vector<8x2x1xf32> to vector<8x2x8xf32>
    %124 = arith.mulf %119, %123 : vector<8x2x8xf32>
    "tpu.trace_start"() <{level = 10 : i32, message = "bks,bsd->bkd"}> : () -> ()
    %cst_77 = arith.constant dense<0.000000e+00> : vector<8x2x32xf32>
    %125 = tpu.matmul %124, %98, %cst_77 {dimension_numbers = #tpu.dot_dimension_numbers<[2], [1], [1], [2], [0, 0, 0, 1, 1, 2], [0], [0]>} : vector<8x2x8xf32>, vector<8x8x32xf32>, vector<8x2x32xf32> -> vector<8x2x32xf32>
    "tpu.trace_stop"() : () -> ()
    %126 = vector.extract_strided_slice %125 {offsets = [0, 0, 0], sizes = [8, 1, 32], strides = [1, 1, 1]} : vector<8x2x32xf32> to vector<8x1x32xf32>
    %127 = vector.shape_cast %126 : vector<8x1x32xf32> to vector<8x32xf32>
    %c2 = arith.constant 2 : index
    %c0_78 = arith.constant 0 : index
    %c0_79 = arith.constant 0 : index
    %128 = vector.load %arg6[%c2, %c0_78, %c0_79] : memref<4x32x128xf32, #tpu.memory_space<vmem>>, vector<1x32x128xf32>
    %129 = vector.shape_cast %128 : vector<1x32x128xf32> to vector<32x128xf32>
    %cst_80 = arith.constant dense<0.000000e+00> : vector<8x128xf32>
    %130 = tpu.matmul %127, %129, %cst_80 {dimension_numbers = #tpu.dot_dimension_numbers<[1], [0], [0], [1], [0, 0, 1, 1], [], []>} : vector<8x32xf32>, vector<32x128xf32>, vector<8x128xf32> -> vector<8x128xf32>
    %c2_81 = arith.constant 2 : index
    %c0_82 = arith.constant 0 : index
    %c0_83 = arith.constant 0 : index
    %131 = vector.load %arg7[%c2_81, %c0_82, %c0_83] : memref<4x1x128xf32, #tpu.memory_space<vmem>>, vector<1x1x128xf32>
    %132 = vector.shape_cast %131 : vector<1x1x128xf32> to vector<1x128xf32>
    %133 = vector.broadcast %132 : vector<1x128xf32> to vector<8x128xf32>
    %134 = arith.addf %130, %133 : vector<8x128xf32>
    %cst_84 = arith.constant dense<0xFF800000> : vector<8xf32>
    %135 = vector.multi_reduction <maximumf>, %134, %cst_84 [1] : vector<8x128xf32> to vector<8xf32>
    %136 = vector.shape_cast %135 : vector<8xf32> to vector<8x1xf32>
    %137 = vector.broadcast %136 : vector<8x1xf32> to vector<8x128xf32>
    %138 = arith.subf %134, %137 : vector<8x128xf32>
    %139 = math.exp %138 : vector<8x128xf32>
    %cst_85 = arith.constant dense<0.000000e+00> : vector<8xf32>
    %140 = vector.multi_reduction <add>, %139, %cst_85 [1] : vector<8x128xf32> to vector<8xf32>
    %141 = vector.shape_cast %140 : vector<8xf32> to vector<8x1xf32>
    %142 = tpu.reciprocal %141 {approx = true} : vector<8x1xf32> -> vector<8x1xf32>
    %143 = vector.broadcast %142 : vector<8x1xf32> to vector<8x128xf32>
    %144 = arith.mulf %139, %143 : vector<8x128xf32>
    %c2_86 = arith.constant 2 : index
    %c0_87 = arith.constant 0 : index
    %c0_88 = arith.constant 0 : index
    %145 = vector.load %arg8[%c2_86, %c0_87, %c0_88] : memref<4x128x32xf32, #tpu.memory_space<vmem>>, vector<1x128x32xf32>
    %146 = vector.shape_cast %145 : vector<1x128x32xf32> to vector<128x32xf32>
    %cst_89 = arith.constant dense<0.000000e+00> : vector<8x32xf32>
    %147 = tpu.matmul %144, %146, %cst_89 {dimension_numbers = #tpu.dot_dimension_numbers<[1], [0], [0], [1], [0, 0, 1, 1], [], []>} : vector<8x128xf32>, vector<128x32xf32>, vector<8x32xf32> -> vector<8x32xf32>
    %148 = vector.extract_strided_slice %125 {offsets = [0, 1, 0], sizes = [8, 1, 32], strides = [1, 1, 1]} : vector<8x2x32xf32> to vector<8x1x32xf32>
    %149 = vector.shape_cast %148 : vector<8x1x32xf32> to vector<8x32xf32>
    %c3 = arith.constant 3 : index
    %c0_90 = arith.constant 0 : index
    %c0_91 = arith.constant 0 : index
    %150 = vector.load %arg6[%c3, %c0_90, %c0_91] : memref<4x32x128xf32, #tpu.memory_space<vmem>>, vector<1x32x128xf32>
    %151 = vector.shape_cast %150 : vector<1x32x128xf32> to vector<32x128xf32>
    %cst_92 = arith.constant dense<0.000000e+00> : vector<8x128xf32>
    %152 = tpu.matmul %149, %151, %cst_92 {dimension_numbers = #tpu.dot_dimension_numbers<[1], [0], [0], [1], [0, 0, 1, 1], [], []>} : vector<8x32xf32>, vector<32x128xf32>, vector<8x128xf32> -> vector<8x128xf32>
    %c3_93 = arith.constant 3 : index
    %c0_94 = arith.constant 0 : index
    %c0_95 = arith.constant 0 : index
    %153 = vector.load %arg7[%c3_93, %c0_94, %c0_95] : memref<4x1x128xf32, #tpu.memory_space<vmem>>, vector<1x1x128xf32>
    %154 = vector.shape_cast %153 : vector<1x1x128xf32> to vector<1x128xf32>
    %155 = vector.broadcast %154 : vector<1x128xf32> to vector<8x128xf32>
    %156 = arith.addf %152, %155 : vector<8x128xf32>
    %cst_96 = arith.constant dense<0xFF800000> : vector<8xf32>
    %157 = vector.multi_reduction <maximumf>, %156, %cst_96 [1] : vector<8x128xf32> to vector<8xf32>
    %158 = vector.shape_cast %157 : vector<8xf32> to vector<8x1xf32>
    %159 = vector.broadcast %158 : vector<8x1xf32> to vector<8x128xf32>
    %160 = arith.subf %156, %159 : vector<8x128xf32>
    %161 = math.exp %160 : vector<8x128xf32>
    %cst_97 = arith.constant dense<0.000000e+00> : vector<8xf32>
    %162 = vector.multi_reduction <add>, %161, %cst_97 [1] : vector<8x128xf32> to vector<8xf32>
    %163 = vector.shape_cast %162 : vector<8xf32> to vector<8x1xf32>
    %164 = tpu.reciprocal %163 {approx = true} : vector<8x1xf32> -> vector<8x1xf32>
    %165 = vector.broadcast %164 : vector<8x1xf32> to vector<8x128xf32>
    %166 = arith.mulf %161, %165 : vector<8x128xf32>
    %c3_98 = arith.constant 3 : index
    %c0_99 = arith.constant 0 : index
    %c0_100 = arith.constant 0 : index
    %167 = vector.load %arg8[%c3_98, %c0_99, %c0_100] : memref<4x128x32xf32, #tpu.memory_space<vmem>>, vector<1x128x32xf32>
    %168 = vector.shape_cast %167 : vector<1x128x32xf32> to vector<128x32xf32>
    %cst_101 = arith.constant dense<0.000000e+00> : vector<8x32xf32>
    %169 = tpu.matmul %166, %168, %cst_101 {dimension_numbers = #tpu.dot_dimension_numbers<[1], [0], [0], [1], [0, 0, 1, 1], [], []>} : vector<8x128xf32>, vector<128x32xf32>, vector<8x32xf32> -> vector<8x32xf32>
    %170 = vector.extract_strided_slice %125 {offsets = [0, 0, 0], sizes = [8, 1, 32], strides = [1, 1, 1]} : vector<8x2x32xf32> to vector<8x1x32xf32>
    %171 = vector.shape_cast %170 : vector<8x1x32xf32> to vector<8x32xf32>
    %cst_102 = arith.constant 4.000000e-01 : f32
    %172 = vector.broadcast %cst_102 : f32 to vector<8x32xf32>
    %173 = arith.mulf %172, %171 : vector<8x32xf32>
    %174 = vector.extract_strided_slice %125 {offsets = [0, 1, 0], sizes = [8, 1, 32], strides = [1, 1, 1]} : vector<8x2x32xf32> to vector<8x1x32xf32>
    %175 = vector.shape_cast %174 : vector<8x1x32xf32> to vector<8x32xf32>
    %cst_103 = arith.constant 6.000000e-01 : f32
    %176 = vector.broadcast %cst_103 : f32 to vector<8x32xf32>
    %177 = arith.mulf %176, %175 : vector<8x32xf32>
    %178 = arith.addf %173, %177 : vector<8x32xf32>
    %cst_104 = arith.constant 4.000000e-01 : f32
    %179 = vector.broadcast %cst_104 : f32 to vector<8x32xf32>
    %180 = arith.mulf %179, %147 : vector<8x32xf32>
    %cst_105 = arith.constant 6.000000e-01 : f32
    %181 = vector.broadcast %cst_105 : f32 to vector<8x32xf32>
    %182 = arith.mulf %181, %169 : vector<8x32xf32>
    %183 = arith.addf %180, %182 : vector<8x32xf32>
    %c0_106 = arith.constant 0 : index
    %c0_107 = arith.constant 0 : index
    %184 = vector.load %arg4[%c0_106, %c0_107] : memref<8x32xf32, #tpu.memory_space<vmem>>, vector<8x32xf32>
    %185 = arith.mulf %178, %183 : vector<8x32xf32>
    %cst_108 = arith.constant dense<0.000000e+00> : vector<8xf32>
    %186 = vector.multi_reduction <add>, %185, %cst_108 [1] : vector<8x32xf32> to vector<8xf32>
    %187 = arith.mulf %184, %183 : vector<8x32xf32>
    %cst_109 = arith.constant dense<0.000000e+00> : vector<8xf32>
    %188 = vector.multi_reduction <add>, %187, %cst_109 [1] : vector<8x32xf32> to vector<8xf32>
    %cst_110 = arith.constant 1.000000e+00 : f32
    %189 = vector.broadcast %cst_110 : f32 to vector<8xf32>
    %190 = arith.subf %189, %186 : vector<8xf32>
    %cst_111 = arith.constant 3.000000e+00 : f32
    %191 = vector.broadcast %cst_111 : f32 to vector<8xf32>
    %192 = arith.mulf %191, %190 : vector<8xf32>
    %193 = arith.addf %192, %188 : vector<8xf32>
    %cst_112 = arith.constant 0.000000e+00 : f32
    %194 = vector.broadcast %cst_112 : f32 to vector<8xf32>
    %195 = arith.maximumf %193, %194 : vector<8xf32>
    %196 = arith.addf %97, %195 : vector<8xf32>
    %197 = vector.shape_cast %196 : vector<8xf32> to vector<1x8xf32>
    %c0_113 = arith.constant 0 : index
    %c0_114 = arith.constant 0 : index
    %198 = vector.load %arg9[%c0_113, %c0_114] : memref<1x8xf32, #tpu.memory_space<vmem>>, vector<1x8xf32>
    tpu.vector_store %arg9[%c0_113, %c0_114], %197 {strides = array<i32>} : memref<1x8xf32, #tpu.memory_space<vmem>>, vector<1x8xf32>,
    return
  }
  func.func @transform_0(%arg0: i32) -> (i32, i32, i32) {
    %c0_i32 = arith.constant 0 : i32
    %c0_i32_0 = arith.constant 0 : i32
    %c0_i32_1 = arith.constant 0 : i32
    return %arg0, %c0_i32, %c0_i32_0 : i32, i32, i32
  }
  func.func @transform_1(%arg0: i32) -> (i32, i32, i32) {
    %c0_i32 = arith.constant 0 : i32
    %c0_i32_0 = arith.constant 0 : i32
    %c0_i32_1 = arith.constant 0 : i32
    return %arg0, %c0_i32, %c0_i32_0 : i32, i32, i32
  }
  func.func @transform_2(%arg0: i32) -> (i32, i32) {
    %c0_i32 = arith.constant 0 : i32
    %c0_i32_0 = arith.constant 0 : i32
    return %arg0, %c0_i32 : i32, i32
  }
  func.func @transform_3(%arg0: i32) -> (i32, i32) {
    %c0_i32 = arith.constant 0 : i32
    %c0_i32_0 = arith.constant 0 : i32
    return %arg0, %c0_i32 : i32, i32
  }
  func.func @transform_4(%arg0: i32) -> (i32, i32, i32) {
    %c0_i32 = arith.constant 0 : i32
    %c0_i32_0 = arith.constant 0 : i32
    %c0_i32_1 = arith.constant 0 : i32
    %c0_i32_2 = arith.constant 0 : i32
    return %c0_i32, %c0_i32_0, %c0_i32_1 : i32, i32, i32
  }
  func.func @transform_5(%arg0: i32) -> (i32, i32, i32) {
    %c0_i32 = arith.constant 0 : i32
    %c0_i32_0 = arith.constant 0 : i32
    %c0_i32_1 = arith.constant 0 : i32
    %c0_i32_2 = arith.constant 0 : i32
    return %c0_i32, %c0_i32_0, %c0_i32_1 : i32, i32, i32
  }
  func.func @transform_6(%arg0: i32) -> (i32, i32, i32) {
    %c0_i32 = arith.constant 0 : i32
    %c0_i32_0 = arith.constant 0 : i32
    %c0_i32_1 = arith.constant 0 : i32
    %c0_i32_2 = arith.constant 0 : i32
    return %c0_i32, %c0_i32_0, %c0_i32_1 : i32, i32, i32
  }
  func.func @transform_7(%arg0: i32) -> (i32, i32, i32) {
    %c0_i32 = arith.constant 0 : i32
    %c0_i32_0 = arith.constant 0 : i32
    %c0_i32_1 = arith.constant 0 : i32
    %c0_i32_2 = arith.constant 0 : i32
    return %c0_i32, %c0_i32_0, %c0_i32_1 : i32, i32, i32
  }
  func.func @transform_8(%arg0: i32) -> (i32, i32) {
    %c0_i32 = arith.constant 0 : i32
    %c0_i32_0 = arith.constant 0 : i32
    return %arg0, %c0_i32 : i32, i32
  }
}

</mosaic_0001>

<bundles_post_ra>
// kernel: tpu_custom_call.1
= control target key start
LH: loop header
LB: loop body
LE: loop exit
PB: predicated region body
PF: predicated region fallthrough
CT: control target
= control target key end

     0   :  { %13 = vsyncpa [#allocation4], 0  ;;  %s6186_s0 = inlined_call_operand.hbm [shape: f32[8,8,32], index: 0, kind: input, shape index: {}]   ;;  %s6187_s1 = inlined_call_operand.hbm [shape: f32[8,8,32], index: 1, kind: input, shape index: {}]   ;;  %s6188_s2 = inlined_call_operand.hbm [shape: f32[8,32], index: 2, kind: input, shape index: {}]   ;;  %s6189_s3 = inlined_call_operand.hbm [shape: f32[8,32], index: 3, kind: input, shape index: {}]   ;;  %s6190_s4 = inlined_call_operand.hbm [shape: f32[2,32,64], index: 4, kind: input, shape index: {}]   ;;  %s6191_s5 = inlined_call_operand.hbm [shape: f32[4,32,128], index: 5, kind: input, shape index: {}]   ;;  %s6192_s6 = inlined_call_operand.hbm [shape: f32[4,1,128], index: 6, kind: input, shape index: {}]   ;;  %s6193_s7 = inlined_call_operand.hbm [shape: f32[4,128,32], index: 7, kind: input, shape index: {}]   ;;  %s6194_s8 = inlined_call_operand.hbm [shape: f32[1,8], index: 8, kind: output, shape index: {}]  }
   0x1   :  { %14 = vsyncpa [#allocation7], 0 }
   0x2   :  { %15 = vsyncpa [#allocation10], 0 }
   0x3   :  { %16 = vsyncpa [#allocation13], 0 }
   0x4   :  { %17 = vsyncpa [#allocation16], 0 }
   0x5   :  { %18 = vsyncpa [#allocation5], 0  ;;  %s5379_s27 = smov [#allocation6]   ;;  %s5380_s29 = smov [#allocation9]  }
   0x6   :  { %s36_s28 = sshll.u32 %s5379_s27, 4  ;;  %s59_s30 = sshll.u32 %s5380_s29, 4  ;;  %s37_s28 = int_to_ptr.vmem [resolvable:$true] %s36_s28  ;;  %s60_s30 = int_to_ptr.vmem [resolvable:$true] %s59_s30 }
   0x7   :  { %s5169_s11 = scalar_lea.hbm %s6187_s1, 1024 }
   0x8   :  { %p5170_p0 = scmp.ne.s32.totalorder %s6187_s1, %s5169_s11  ;;  %p5173_p1 = scmp.lt.u32.totalorder %s5169_s11, %s6187_s1 }
   0xa   :  { %p5175_p2 = pnand %p5173_p1, %p5170_p0 }
   0xc   :  { %5178 = shalt.err (!%p5175_p2)
}
   0xd   :  { %s5179_s16 = scalar_lea.vmem %s37_s28, 1024  ;;  %p5184_p4 = scmp.lt.s32.totalorder %s37_s28, %s37_s28 }
   0xe   :  { %p5180_p3 = scmp.ne.s32.totalorder %s37_s28, %s5179_s16  ;;  %p5185_p5 = scmp.lt.s32.totalorder %s5179_s16, %s5179_s16 }
  0x10   :  { %p5186_p6 = por %p5185_p5, %p5184_p4 }
  0x12   :  { %p5187_p7 = pnand %p5186_p6, %p5180_p3 }
  0x14   :  { %5190 = shalt.err (!%p5187_p7)
}
  0x15   :  { %s5381_s17 = smov 128   ;;  %s5382_s18 = smov 8  }
  0x16   :  { %42 = dma.hbm_to_vmem [thread:$0]  %s6187_s1, 1024, %s37_s28, [#allocation7], %s5381_s17, %s5381_s17, %s5382_s18  }
  0x17   :  { %s5191_s23 = scalar_lea.hbm %s6189_s3, 128 }
  0x18   :  { %p5192_p8 = scmp.ne.s32.totalorder %s6189_s3, %s5191_s23  ;;  %p5195_p9 = scmp.lt.u32.totalorder %s5191_s23, %s6189_s3 }
  0x1a   :  { %p5197_p10 = pnand %p5195_p9, %p5192_p8 }
  0x1c   :  { %5200 = shalt.err (!%p5197_p10)
}
  0x1d   :  { %s5201_s29 = scalar_lea.vmem %s60_s30, 128  ;;  %p5206_p12 = scmp.lt.s32.totalorder %s60_s30, %s60_s30 }
  0x1e   :  { %p5202_p11 = scmp.ne.s32.totalorder %s60_s30, %s5201_s29  ;;  %p5207_p13 = scmp.lt.s32.totalorder %s5201_s29, %s5201_s29 }
  0x20   :  { %p5208_p0 = por %p5207_p13, %p5206_p12 }
  0x22   :  { %p5209_p1 = pnand %p5208_p0, %p5202_p11 }
  0x24   :  { %5212 = shalt.err (!%p5209_p1)
}
  0x25   :  { %62 = dma.hbm_to_vmem [thread:$0]  %s6189_s3, 128, %s60_s30, [#allocation10]  }
  0x26   :  { %s5383_s9 = smov [#allocation12]   ;;  %s5384_s11 = smov [#allocation3]  }
  0x27   :  { %s80_s10 = sshll.u32 %s5383_s9, 4  ;;  %s24_s12 = sshll.u32 %s5384_s11, 4  ;;  %s81_s10 = int_to_ptr.vmem [resolvable:$true] %s80_s10  ;;  %s5469_s12 = int_to_ptr.vmem [resolvable:$true] %s24_s12 }
  0x28   :  { %s5213_s15 = scalar_lea.hbm %s6191_s5, 2048 }
  0x29   :  { %p5214_p2 = scmp.ne.s32.totalorder %s6191_s5, %s5213_s15  ;;  %p5217_p3 = scmp.lt.u32.totalorder %s5213_s15, %s6191_s5 }
  0x2b   :  { %p5219_p4 = pnand %p5217_p3, %p5214_p2 }
  0x2d   :  { %5222 = shalt.err (!%p5219_p4)
}
  0x2e   :  { %s5223_s3 = scalar_lea.vmem %s81_s10, 2048  ;;  %p5228_p6 = scmp.lt.s32.totalorder %s81_s10, %s81_s10 }
  0x2f   :  { %p5224_p5 = scmp.ne.s32.totalorder %s81_s10, %s5223_s3  ;;  %p5229_p7 = scmp.lt.s32.totalorder %s5223_s3, %s5223_s3 }
  0x31   :  { %p5230_p8 = por %p5229_p7, %p5228_p6 }
  0x33   :  { %p5231_p9 = pnand %p5230_p8, %p5224_p5 }
  0x35   :  { %5234 = shalt.err (!%p5231_p9)
}
  0x36   :  { %86 = dma.hbm_to_vmem [thread:$0]  %s6191_s5, 2048, %s81_s10, [#allocation13], %s5381_s17, %s5381_s17, %s5382_s18  }
  0x37   :  { %s5235_s25 = scalar_lea.hbm %s6186_s0, 1024 }
  0x38   :  { %p5236_p10 = scmp.ne.s32.totalorder %s6186_s0, %s5235_s25  ;;  %p5239_p11 = scmp.lt.u32.totalorder %s5235_s25, %s6186_s0 }
  0x3a   :  { %p5241_p12 = pnand %p5239_p11, %p5236_p10 }
  0x3c   :  { %5244 = shalt.err (!%p5241_p12)
}
  0x3d   :  { %s5245_s28 = scalar_lea.vmem %s5469_s12, 1024  ;;  %p5250_p0 = scmp.lt.s32.totalorder %s5469_s12, %s5469_s12 }
  0x3e   :  { %p5246_p13 = scmp.ne.s32.totalorder %s5469_s12, %s5245_s28  ;;  %p5251_p1 = scmp.lt.s32.totalorder %s5245_s28, %s5245_s28 }
  0x40   :  { %p5252_p2 = por %p5251_p1, %p5250_p0 }
  0x42   :  { %p5253_p3 = pnand %p5252_p2, %p5246_p13 }
  0x44   :  { %5256 = shalt.err (!%p5253_p3)
}
  0x45   :  { %30 = dma.hbm_to_vmem [thread:$0]  %s6186_s0, 1024, %s5469_s12, [#allocation4], %s5381_s17, %s5381_s17, %s5382_s18  }
  0x46   :  { %s5385_s10 = smov [#allocation8]   ;;  %s5386_s13 = smov [#allocation11]  }
  0x47   :  { %s49_s11 = sshll.u32 %s5385_s10, 4  ;;  %s68_s14 = sshll.u32 %s5386_s13, 4  ;;  %s50_s11 = int_to_ptr.vmem [resolvable:$true] %s49_s11  ;;  %s5506_s14 = int_to_ptr.vmem [resolvable:$true] %s68_s14 }
  0x48   :  { %s5257_s19 = scalar_lea.hbm %s6188_s2, 128 }
  0x49   :  { %p5258_p4 = scmp.ne.s32.totalorder %s6188_s2, %s5257_s19  ;;  %p5261_p5 = scmp.lt.u32.totalorder %s5257_s19, %s6188_s2 }
  0x4b   :  { %p5263_p6 = pnand %p5261_p5, %p5258_p4 }
  0x4d   :  { %5266 = shalt.err (!%p5263_p6)
}
  0x4e   :  { %s5267_s0 = scalar_lea.vmem %s50_s11, 128  ;;  %p5272_p8 = scmp.lt.s32.totalorder %s50_s11, %s50_s11 }
  0x4f   :  { %p5268_p7 = scmp.ne.s32.totalorder %s50_s11, %s5267_s0  ;;  %p5273_p9 = scmp.lt.s32.totalorder %s5267_s0, %s5267_s0 }
  0x51   :  { %p5274_p10 = por %p5273_p9, %p5272_p8 }
  0x53   :  { %p5275_p11 = pnand %p5274_p10, %p5268_p7 }
  0x55   :  { %5278 = shalt.err (!%p5275_p11)
}
  0x56   :  { %52 = dma.hbm_to_vmem [thread:$0]  %s6188_s2, 128, %s50_s11, [#allocation7]  }
  0x57   :  { %s5279_s25 = scalar_lea.hbm %s6190_s4, 1024 }
  0x58   :  { %p5280_p12 = scmp.ne.s32.totalorder %s6190_s4, %s5279_s25  ;;  %p5283_p13 = scmp.lt.u32.totalorder %s5279_s25, %s6190_s4 }
  0x5a   :  { %p5285_p0 = pnand %p5283_p13, %p5280_p12 }
  0x5c   :  { %5288 = shalt.err (!%p5285_p0)
}
  0x5d   :  { %s5289_s28 = scalar_lea.vmem %s5506_s14, 1024  ;;  %p5294_p2 = scmp.lt.s32.totalorder %s5506_s14, %s5506_s14 }
  0x5e   :  { %p5290_p1 = scmp.ne.s32.totalorder %s5506_s14, %s5289_s28  ;;  %p5295_p3 = scmp.lt.s32.totalorder %s5289_s28, %s5289_s28 }
  0x60   :  { %p5296_p4 = por %p5295_p3, %p5294_p2 }
  0x62   :  { %p5297_p5 = pnand %p5296_p4, %p5290_p1 }
  0x64   :  { %5300 = shalt.err (!%p5297_p5)
}
  0x65   :  { %74 = dma.hbm_to_vmem [thread:$0]  %s6190_s4, 1024, %s5506_s14, [#allocation10], %s5381_s17, %s5381_s17, %s5382_s18  }
  0x66   :  { %s5387_s9 = smov [#allocation14]   ;;  %s5301_s15 = scalar_lea.hbm %s6192_s6, 64 }
  0x67   :  { %s92_s10 = sshll.u32 %s5387_s9, 4  ;;  %p5302_p6 = scmp.ne.s32.totalorder %s6192_s6, %s5301_s15  ;;  %s93_s10 = int_to_ptr.vmem [resolvable:$true] %s92_s10 }
  0x68   :  { %p5305_p7 = scmp.lt.u32.totalorder %s5301_s15, %s6192_s6 }
  0x6a   :  { %p5307_p8 = pnand %p5305_p7, %p5302_p6 }
  0x6c   :  { %5310 = shalt.err (!%p5307_p8)
}
  0x6d   :  { %s5311_s3 = scalar_lea.vmem %s93_s10, 64  ;;  %p5316_p10 = scmp.lt.s32.totalorder %s93_s10, %s93_s10 }
  0x6e   :  { %p5312_p9 = scmp.ne.s32.totalorder %s93_s10, %s5311_s3  ;;  %p5317_p11 = scmp.lt.s32.totalorder %s5311_s3, %s5311_s3 }
  0x70   :  { %p5318_p12 = por %p5317_p11, %p5316_p10 }
  0x72   :  { %p5319_p13 = pnand %p5318_p12, %p5312_p9 }
  0x74   :  { %5322 = shalt.err (!%p5319_p13)
}
  0x75   :  { %s5388_s4 = smov 16   ;;  %s5389_s14 = smov 1  }
  0x76   :  { %98 = dma.hbm_to_vmem [thread:$0]  %s6192_s6, 64, %s93_s10, [#allocation13], %s5388_s4, %s5388_s4, %s5389_s14  }
  0x77   :  { %s5390_s12 = smov [#allocation15]   ;;  %s5323_s25 = scalar_lea.hbm %s6193_s7, 8192 }
  0x78   :  { %s104_s22 = sshll.u32 %s5390_s12, 4  ;;  %p5324_p0 = scmp.ne.s32.totalorder %s6193_s7, %s5323_s25  ;;  %s105_s22 = int_to_ptr.vmem [resolvable:$true] %s104_s22 }
  0x79   :  { %p5327_p1 = scmp.lt.u32.totalorder %s5323_s25, %s6193_s7 }
  0x7b   :  { %p5329_p2 = pnand %p5327_p1, %p5324_p0 }
  0x7d   :  { %5332 = shalt.err (!%p5329_p2)
}
  0x7e   :  { %s5333_s28 = scalar_lea.vmem %s105_s22, 8192  ;;  %p5338_p4 = scmp.lt.s32.totalorder %s105_s22, %s105_s22 }
  0x7f   :  { %p5334_p3 = scmp.ne.s32.totalorder %s105_s22, %s5333_s28  ;;  %p5339_p5 = scmp.lt.s32.totalorder %s5333_s28, %s5333_s28 }
  0x81   :  { %p5340_p6 = por %p5339_p5, %p5338_p4 }
  0x83   :  { %p5341_p7 = pnand %p5340_p6, %p5334_p3 }
  0x85   :  { %5344 = shalt.err (!%p5341_p7)
}
  0x86   :  { %110 = dma.hbm_to_vmem [thread:$0]  %s6193_s7, 8192, %s105_s22, [#allocation16], %s5381_s17, %s5381_s17, %s5382_s18  }
  0x87   :  { %5367 = dma.done.wait [#allocation4], 1024  }
  0x88   :  { %5368 = vsyncadd [#allocation4], 4294966272 }
  0x89   :  { %5369 = dma.done.wait [#allocation7], 1152  }
  0x8a   :  { %5370 = vsyncadd [#allocation7], 4294966144 }
  0x8b   :  { %5371 = dma.done.wait [#allocation10], 1152  }
  0x8c   :  { %5372 = vsyncadd [#allocation10], 4294966144 }
  0x8d   :  { %5373 = dma.done.wait [#allocation13], 2112  }
  0x8e   :  { %5374 = vsyncadd [#allocation13], 4294965184 }
  0x8f   :  { %5375 = dma.done.wait [#allocation16], 8192  }
  0x90   :  { %5376 = vsyncadd [#allocation16], 4294959104  ;;  %v5391_v0 = vmov 0.0|0.0   ;;  %vm5392_vm0 = vmmov 0   ;;  %v5393_v1 = vmov 0.0   ;;  %vm143_vm1 = vcmask 261120  }
  0x91   :  { %4939 = vmatprep.subr.bf16.mxu1 %v5391_v0  ;;  %4581 = vmatprep.mubr.msk.f32.mxu1 %vm5392_vm0, %v5393_v1  ;;  %v209_v2 = vld [vmem:[#allocation11] sm:$0xff]  ;;  %v210_v3 = vld [vmem:[#allocation11 + $0x8] sm:$0xff]  ;;  %v211_v4 = vld [vmem:[#allocation11 + $0x10] sm:$0xff]  ;;  %vm221_vm2 = vcmask 1041409   ;;  %vm223_vm3 = vcmask 1042434   ;;  %vm225_vm4 = vcmask 1043459  }
  0x92   :  { %4594 = vmatprep.subr.mxu0 %v5393_v1  ;;  %4596 = vmatprep.mubr.msk.f32.mxu0 %vm5392_vm0, %v5393_v1  ;;  %v4940_v5 = vpack.c.bf16 %v210_v3, %v209_v2  ;;  %v212_v6 = vld [vmem:[#allocation11 + $0x18] sm:$0xff]  ;;  %v5573_v7 = vld [vmem:[#allocation3] sm:$0xff]  ;;  %v5577_v9 = vld [vmem:[#allocation3 + $0x10] sm:$0xff]  ;;  %vm227_vm5 = vcmask 1044484   ;;  %vm229_vm6 = vcmask 1045509   ;;  %vm231_vm7 = vcmask 1046534  }
  0x93   :  { %v5575_v8 = vld [vmem:[#allocation3 + $0x8] sm:$0xff]  ;;  %v5579_v10 = vld [vmem:[#allocation3 + $0x18] sm:$0xff]  ;;  %v5581_v11 = vld [vmem:[#allocation3 + $0x20] sm:$0xff]  ;;  %v144_v12 = vsel %vm143_vm1, %v5573_v7, 0.0  ;;  %v4943_v14 = vpack.c.bf16 %v212_v6, %v211_v4  ;;  %v158_v20 = vsel %vm143_vm1, %v5577_v9, 0.0  ;;  %4595 = vmatpush3.xpose.msk.msra.mxu0 %vm143_vm1, %v5577_v9  ;;  %vm233_vm8 = vcmask 1047559  }
  0x94   :  { %v151_v13 = vsel %vm143_vm1, %v5575_v8, 0.0  ;;  %4941 = vmatpush3.bf16.msra.mxu1 %v4940_v5  ;;  %v5587_v15 = vld [vmem:[#allocation3 + $0x28] sm:$0xff]  ;;  %v5589_v16 = vld [vmem:[#allocation3 + $0x30] sm:$0xff]  ;;  %v5591_v17 = vld [vmem:[#allocation3 + $0x38] sm:$0xff]  ;;  %v145_v18 = vrot.slane %v144_v12, 4  ;;  %v159_v21 = vrot.slane %v158_v20, 4  ;;  %4604 = vmatprep.subr.mxu0 %v5393_v1 }
  0x95   :  { %v152_v19 = vrot.slane %v151_v13, 4  ;;  %4942 = vmatprep.subr.bf16.mxu1 %v5391_v0  ;;  %v165_v22 = vsel %vm143_vm1, %v5579_v10, 0.0  ;;  %v172_v23 = vsel %vm143_vm1, %v5581_v11, 0.0  ;;  %v179_v24 = vsel %vm143_vm1, %v5587_v15, 0.0  ;;  %s5395_s7 = smov 96   ;;  %s5396_s17 = smov [#allocation17]  }
  0x96   :  { %v146_v25 = vadd.f32 %v145_v18, %v144_v12  ;;  %v166_v27 = vrot.slane %v165_v22, 4  ;;  %v173_v28 = vrot.slane %v172_v23, 4  ;;  %v160_v29 = vadd.f32 %v159_v21, %v158_v20  ;;  %s4340_s18 = sshll.u32 %s5396_s17, 4  ;;  %s4341_s18 = int_to_ptr.vmem [resolvable:$true] %s4340_s18 }
  0x97   :  { %v153_v26 = vadd.f32 %v152_v19, %v151_v13  ;;  %v180_v30 = vrot.slane %v179_v24, 4  ;;  %v186_v31 = vsel %vm143_vm1, %v5589_v16, 0.0  ;;  %v193_v32 = vsel %vm143_vm1, %v5591_v17, 0.0  ;;  %s5345_s5 = scalar_lea.vmem %s4341_s18, 16  ;;  %s5349_s9 = scalar_lea.vmem %s4341_s18, 32 }
  0x98   :  { %4944 = vmatpush3.bf16.msra.mxu1 %v4943_v14  ;;  %v147_v33 = vrot.slane %v146_v25, 2  ;;  %v167_v35 = vadd.f32 %v166_v27, %v165_v22  ;;  %v174_v36 = vadd.f32 %v173_v28, %v172_v23  ;;  %v161_v37 = vrot.slane %v160_v29, 2  ;;  %p5346_p8 = scmp.ne.s32.totalorder %s4341_s18, %s5345_s5  ;;  %p5350_p9 = scmp.lt.s32.totalorder %s4341_s18, %s4341_s18 }
  0x99   :  { %v154_v34 = vrot.slane %v153_v26, 2  ;;  %v181_v38 = vadd.f32 %v180_v30, %v179_v24  ;;  %v187_v39 = vrot.slane %v186_v31, 4  ;;  %v194_v40 = vrot.slane %v193_v32, 4  ;;  %4584 = vmatprep.subr.mxu1 %v5393_v1  ;;  %p5351_p10 = scmp.lt.s32.totalorder %s5349_s9, %s5345_s5 }
  0x9a   :  { %v148_v41 = vadd.f32 %v147_v33, %v146_v25  ;;  %v168_v43 = vrot.slane %v167_v35, 2  ;;  %v175_v44 = vrot.slane %v174_v36, 2  ;;  %v162_v45 = vadd.f32 %v161_v37, %v160_v29 }
  0x9b   :  { %v155_v42 = vadd.f32 %v154_v34, %v153_v26  ;;  %v182_v46 = vrot.slane %v181_v38, 2  ;;  %v188_v47 = vadd.f32 %v187_v39, %v186_v31  ;;  %v195_v48 = vadd.f32 %v194_v40, %v193_v32  ;;  %p5352_p11 = por %p5351_p10, %p5350_p9 }
  0x9c   :  { %v149_v49 = vrot.slane %v148_v41, 1  ;;  %v169_v51 = vadd.f32 %v168_v43, %v167_v35  ;;  %v176_v52 = vadd.f32 %v175_v44, %v174_v36  ;;  %v163_v53 = vrot.slane %v162_v45, 1 }
  0x9d   :  { %v156_v50 = vrot.slane %v155_v42, 1  ;;  %v183_v54 = vadd.f32 %v182_v46, %v181_v38  ;;  %v189_v55 = vrot.slane %v188_v47, 2  ;;  %v196_v56 = vrot.slane %v195_v48, 2  ;;  %p5353_p12 = pnand %p5352_p11, %p5346_p8 }
  0x9e   :  { %v150_v57 = vadd.f32 %v149_v49, %v148_v41  ;;  %v170_v59 = vrot.slane %v169_v51, 1  ;;  %v177_v60 = vrot.slane %v176_v52, 1  ;;  %v164_v61 = vadd.f32 %v163_v53, %v162_v45 }
  0x9f   :  { %v157_v58 = vadd.f32 %v156_v50, %v155_v42  ;;  %v184_v62 = vrot.slane %v183_v54, 1  ;;  %v190_v63 = vadd.f32 %v189_v55, %v188_v47  ;;  %v197_v2 = vadd.f32 %v196_v56, %v195_v48 }
  0xa0   :  { %v171_v3 = vadd.f32 %v170_v59, %v169_v51  ;;  %v178_v4 = vadd.f32 %v177_v60, %v176_v52  ;;  %v201_v5 = vmul.f32 0.125, %v150_v57  ;;  %v203_v18 = vmul.f32 0.125, %v164_v61 }
  0xa1   :  { %v202_v6 = vmul.f32 0.125, %v157_v58  ;;  %v185_v12 = vadd.f32 %v184_v62, %v183_v54  ;;  %v191_v13 = vrot.slane %v190_v63, 1  ;;  %v198_v14 = vrot.slane %v197_v2, 1 }
  0xa2   :  { %v204_v19 = vmul.f32 0.125, %v171_v3  ;;  %v205_v20 = vmul.f32 0.125, %v178_v4  ;;  %v5394_v33 = vmov 1966171168   ;;  %v312_v35 = vlaneseq }
  0xa3   :  { %v222_v21 = vsel %vm221_vm2, %v202_v6, %v201_v5  ;;  %v192_v22 = vadd.f32 %v191_v13, %v190_v63  ;;  %v199_v23 = vadd.f32 %v198_v14, %v197_v2  ;;  %v206_v24 = vmul.f32 0.125, %v185_v12 }
  0xa4   :  { %v224_v25 = vsel %vm223_vm3, %v203_v18, %v222_v21  ;;  %v310_v34 = vunpack.c.l.s4 %v5394_v33  ;;  %v5624_v37 = vshrl.u32 %v312_v35, 7  ;;  %vm365_vm9 = vcmask 253952  }
  0xa5   :  { %v226_v26 = vsel %vm225_vm4, %v204_v19, %v224_v25  ;;  %v207_v27 = vmul.f32 0.125, %v192_v22  ;;  %v208_v28 = vmul.f32 0.125, %v199_v23  ;;  %vm1054_vm10 = vcmask 58368  }
  0xa6   :  { %v228_v29 = vsel %vm227_vm5, %v205_v20, %v226_v26  ;;  %v311_v36 = vunpack.c.0.s8 %v310_v34  ;;  %v5631_v42 = vsub.s32 0, %v5624_v37  ;;  %vm1143_vm11 = vcmask 64512  }
  0xa7   :  { %v230_v30 = vsel %vm229_vm6, %v206_v24, %v228_v29  ;;  %vm4332_vm12 = vcmask 57344  }
  0xa8   :  { %v232_v31 = vsel %vm231_vm7, %v207_v27, %v230_v30  ;;  %v5627_v38 = vsub.s32 %v311_v36, %v5624_v37 }
  0xa9   :  { %v234_v32 = vsel %vm233_vm8, %v208_v28, %v232_v31 }
  0xaa   :  { %4582 = vmatmul.mubr.msk.f32.vlgmr.msra.gmra.mrb[0].mxu1 %vm143_vm1, %v234_v32 }
  0xab   :  { %4585 = vmatpush3.xpose.msk.msra.mxu1 %vm143_vm1, %v5573_v7  ;;  %4586 = vmatprep.mubr.msk.f32.mxu1 %vm5392_vm0, %v5393_v1 }
  0xac   :  { %4589 = vmatprep.subr.mxu1 %v5393_v1 }
 0x17d   :  { %v303_v39 = vpop.f32.mrb[0].mxu1 }
 0x17e   :  { %v308_v40 = vcombine.high %v303_v39, %v303_v39  ;;  %v315_v41 = vrot.slane %v303_v39, %v5627_v38  ;;  %v4583_v43 = vpop.f32.mrb[1].mxu1 }
 0x180   :  { %v322_v44 = vrot.slane %v308_v40, %v5627_v38  ;;  %v323_v45 = vcombine.high %v315_v41, %v315_v41  ;;  %v331_v46 = vrot.slane %v315_v41, %v5627_v38 }
 0x182   :  { %v324_v47 = vcombine.high %v322_v44, %v322_v44  ;;  %v338_v48 = vrot.slane %v322_v44, %v5627_v38  ;;  %v345_v49 = vrot.slane %v323_v45, %v5627_v38  ;;  %366 = vst.msk [vmem:[#allocation2] sm:$0x1] %vm365_vm9, %v331_v46  ;;  %v377_v50 = vrot.slane %v331_v46, %v5631_v42 }
 0x183   :  { %v353_v51 = vcombine.high %v331_v46, %v331_v46 }
 0x184   :  { %v352_v52 = vrot.slane %v324_v47, %v5627_v38  ;;  %367 = vst.msk [vmem:[#allocation2 + $0x2] sm:$0x1] %vm365_vm9, %v345_v49  ;;  %370 = vst.msk [vmem:[#allocation2 + $0x8] sm:$0x1] %vm365_vm9, %v338_v48  ;;  %406 = vrot.lane.b32.xlu0 %v377_v50, %s5395_s7  ;;  %v355_v53 = vcombine.high %v345_v49, %v345_v49  ;;  %v354_v55 = vcombine.high %v338_v48, %v338_v48 }
 0x185   :  { %v385_v54 = vrot.slane %v353_v51, %v5631_v42  ;;  %368 = vst.msk [vmem:[#allocation2 + $0x4] sm:$0x1] %vm365_vm9, %v353_v51  ;;  %v381_v56 = vrot.slane %v345_v49, %v5631_v42  ;;  %v393_v59 = vrot.slane %v338_v48, %v5631_v42 }
 0x186   :  { %371 = vst.msk [vmem:[#allocation2 + $0xa] sm:$0x1] %vm365_vm9, %v352_v52  ;;  %369 = vst.msk [vmem:[#allocation2 + $0x6] sm:$0x1] %vm365_vm9, %v355_v53  ;;  %v356_v57 = vcombine.high %v352_v52, %v352_v52  ;;  %v389_v58 = vrot.slane %v355_v53, %v5631_v42  ;;  %v397_v60 = vrot.slane %v352_v52, %v5631_v42 }
 0x187   :  { %410 = vrot.lane.b32.xlu1 %v385_v54, %s5395_s7  ;;  %372 = vst.msk [vmem:[#allocation2 + $0xc] sm:$0x1] %vm365_vm9, %v354_v55  ;;  %v401_v61 = vrot.slane %v354_v55, %v5631_v42 }
 0x188   :  { %408 = vrot.lane.b32.xlu0 %v381_v56, %s5395_s7  ;;  %373 = vst.msk [vmem:[#allocation2 + $0xe] sm:$0x1] %vm365_vm9, %v356_v57  ;;  %v405_v62 = vrot.slane %v356_v57, %v5631_v42 }
 0x18b   :  { %412 = vrot.lane.b32.xlu1 %v389_v58, %s5395_s7 }
 0x18c   :  { %414 = vrot.lane.b32.xlu0 %v393_v59, %s5395_s7 }
 0x18f   :  { %416 = vrot.lane.b32.xlu1 %v397_v60, %s5395_s7 }
 0x190   :  { %418 = vrot.lane.b32.xlu0 %v401_v61, %s5395_s7 }
 0x193   :  { %420 = vrot.lane.b32.xlu1 %v405_v62, %s5395_s7 }
 0x1f6   :  { %v407_v63 = vpop.permute.xlu0 %406 }
 0x1f7   :  { %430 = vst.msk [vmem:[#allocation2 + $0x1] sm:$0x1] %vm365_vm9, %v407_v63 }
 0x1f9   :  { %v411_v2 = vpop.permute.xlu1 %410 }
 0x1fa   :  { %432 = vst.msk [vmem:[#allocation2 + $0x5] sm:$0x1] %vm365_vm9, %v411_v2  ;;  %v409_v3 = vpop.permute.xlu0 %408 }
 0x1fb   :  { %431 = vst.msk [vmem:[#allocation2 + $0x3] sm:$0x1] %vm365_vm9, %v409_v3 }
 0x1fd   :  { %v413_v4 = vpop.permute.xlu1 %412 }
 0x1fe   :  { %433 = vst.msk [vmem:[#allocation2 + $0x7] sm:$0x1] %vm365_vm9, %v413_v4  ;;  %v415_v5 = vpop.permute.xlu0 %414  ;;  %v438_v6 = vld [vmem:[#allocation2] sm:$0x3] }
 0x1ff   :  { %434 = vst.msk [vmem:[#allocation2 + $0x9] sm:$0x1] %vm365_vm9, %v415_v5  ;;  %4587 = vmatmul.mubr.msk.f32.vlgmr.msra.gmra.mrb[2].mxu1 %vm143_vm1, %v438_v6 }
 0x200   :  { %4590 = vmatpush3.xpose.msk.msra.mxu1 %vm143_vm1, %v5575_v8  ;;  %4591 = vmatprep.mubr.msk.f32.mxu1 %vm5392_vm0, %v5393_v1 }
 0x201   :  { %v417_v12 = vpop.permute.xlu1 %416  ;;  %v440_v13 = vld [vmem:[#allocation2 + $0x4] sm:$0x3]  ;;  %4599 = vmatprep.subr.mxu1 %v5393_v1 }
 0x202   :  { %435 = vst.msk [vmem:[#allocation2 + $0xb] sm:$0x1] %vm365_vm9, %v417_v12  ;;  %4597 = vmatmul.mubr.msk.f32.vlgmr.msra.gmra.mrb[0].mxu0 %vm143_vm1, %v440_v13  ;;  %v419_v14 = vpop.permute.xlu0 %418  ;;  %v439_v18 = vld [vmem:[#allocation2 + $0x2] sm:$0x3] }
 0x203   :  { %436 = vst.msk [vmem:[#allocation2 + $0xd] sm:$0x1] %vm365_vm9, %v419_v14  ;;  %4592 = vmatmul.mubr.msk.f32.vlgmr.msra.gmra.mrb[4].mxu1 %vm143_vm1, %v439_v18  ;;  %4605 = vmatpush3.xpose.msk.msra.mxu0 %vm143_vm1, %v5581_v11 }
 0x204   :  { %4600 = vmatpush3.xpose.msk.msra.mxu1 %vm143_vm1, %v5579_v10  ;;  %4601 = vmatprep.mubr.msk.f32.mxu1 %vm5392_vm0, %v5393_v1 }
 0x205   :  { %v421_v19 = vpop.permute.xlu1 %420  ;;  %4606 = vmatprep.mubr.msk.f32.mxu0 %vm5392_vm0, %v5393_v1  ;;  %4609 = vmatprep.subr.mxu1 %v5393_v1  ;;  %v441_v20 = vld [vmem:[#allocation2 + $0x6] sm:$0x3] }
 0x206   :  { %437 = vst.msk [vmem:[#allocation2 + $0xf] sm:$0x1] %vm365_vm9, %v421_v19  ;;  %v442_v21 = vld [vmem:[#allocation2 + $0x8] sm:$0x3]  ;;  %4614 = vmatprep.subr.mxu0 %v5393_v1 }
 0x207   :  { %4602 = vmatmul.mubr.msk.f32.vlgmr.msra.gmra.mrb[6].mxu1 %vm143_vm1, %v441_v20  ;;  %4607 = vmatmul.mubr.msk.f32.vlgmr.msra.gmra.mrb[2].mxu0 %vm143_vm1, %v442_v21 }
 0x208   :  { %4610 = vmatpush3.xpose.msk.msra.mxu1 %vm143_vm1, %v5587_v15  ;;  %4615 = vmatpush3.xpose.msk.msra.mxu0 %vm143_vm1, %v5589_v16 }
 0x209   :  { %4611 = vmatprep.mubr.msk.f32.mxu1 %vm5392_vm0, %v5393_v1  ;;  %4616 = vmatprep.mubr.msk.f32.mxu0 %vm5392_vm0, %v5393_v1  ;;  %v443_v22 = vld [vmem:[#allocation2 + $0xa] sm:$0x3] }
 0x20a   :  { %4619 = vmatprep.subr.mxu1 %v5393_v1  ;;  %v444_v23 = vld [vmem:[#allocation2 + $0xc] sm:$0x3]  ;;  %4624 = vmatprep.subr.mxu0 %v5393_v1 }
 0x20b   :  { %4612 = vmatmul.mubr.msk.f32.vlgmr.msra.gmra.mrb[8].mxu1 %vm143_vm1, %v443_v22  ;;  %4617 = vmatmul.mubr.msk.f32.vlgmr.msra.gmra.mrb[4].mxu0 %vm143_vm1, %v444_v23 }
 0x20c   :  { %4620 = vmatpush3.xpose.msk.msra.mxu1 %vm143_vm1, %v5591_v17  ;;  %4621 = vmatprep.mubr.msk.f32.mxu1 %vm5392_vm0, %v5393_v1 }
 0x20d   :  { %4625 = vmatpush3.msra.mxu0 %v5573_v7  ;;  %4626 = vmatprep.mubr.msk.f32.mxu0 %vm5392_vm0, %v5393_v1  ;;  %v445_v24 = vld [vmem:[#allocation2 + $0xe] sm:$0x3] }
 0x20e   :  { %4629 = vmatprep.subr.mxu1 %v5393_v1  ;;  %4634 = vmatprep.subr.mxu0 %v5393_v1 }
 0x20f   :  { %4622 = vmatmul.mubr.msk.f32.vlgmr.msra.gmra.mrb[10].mxu1 %vm143_vm1, %v445_v24 }
 0x210   :  { %4630 = vmatpush3.msra.mxu1 %v5575_v8  ;;  %4631 = vmatprep.mubr.msk.f32.mxu1 %vm5392_vm0, %v5393_v1 }
 0x211   :  { %4639 = vmatprep.subr.mxu1 %v5393_v1 }
 0x2d2   :  { %v518_v25 = vpop.f32.mrb[2].mxu1 }
 0x2d3   :  { %v4588_v7 = vpop.f32.mrb[3].mxu1  ;;  %v1055_v26 = vsel %vm1054_vm10, %v518_v25, -inf }
 0x2d4   :  { %1056 = vmax.xlane.f32.xlu0 %v1055_v26 }
 0x2d5   :  { %v670_v27 = vpop.f32.mrb[0].mxu0 }
 0x2d6   :  { %v4598_v28 = vpop.f32.mrb[1].mxu0  ;;  %v594_v29 = vpop.f32.mrb[4].mxu1  ;;  %v1061_v31 = vsel %vm1054_vm10, %v670_v27, -inf }
 0x2d7   :  { %v4593_v30 = vpop.f32.mrb[5].mxu1  ;;  %v1058_v32 = vsel %vm1054_vm10, %v594_v29, -inf }
 0x2d8   :  { %1062 = vmax.xlane.f32.xlu0 %v1061_v31  ;;  %1059 = vmax.xlane.f32.xlu1 %v1058_v32 }
 0x2da   :  { %v746_v8 = vpop.f32.mrb[6].mxu1  ;;  %v822_v33 = vpop.f32.mrb[2].mxu0 }
 0x2db   :  { %v4603_v34 = vpop.f32.mrb[7].mxu1  ;;  %v4608_v36 = vpop.f32.mrb[3].mxu0  ;;  %v1067_v39 = vsel %vm1054_vm10, %v822_v33, -inf  ;;  %v1064_v40 = vsel %vm1054_vm10, %v746_v8, -inf }
 0x2dc   :  { %1068 = vmax.xlane.f32.xlu1 %v1067_v39  ;;  %1065 = vmax.xlane.f32.xlu0 %v1064_v40 }
 0x2de   :  { %v898_v41 = vpop.f32.mrb[8].mxu1  ;;  %v974_v43 = vpop.f32.mrb[4].mxu0 }
 0x2df   :  { %v4613_v44 = vpop.f32.mrb[9].mxu1  ;;  %v4618_v45 = vpop.f32.mrb[5].mxu0  ;;  %v1073_v46 = vsel %vm1054_vm10, %v974_v43, -inf  ;;  %v1070_v47 = vsel %vm1054_vm10, %v898_v41, -inf }
 0x2e0   :  { %1074 = vmax.xlane.f32.xlu1 %v1073_v46  ;;  %1071 = vmax.xlane.f32.xlu0 %v1070_v47 }
 0x2e2   :  { %v1050_v48 = vpop.f32.mrb[10].mxu1 }
 0x2e3   :  { %v4623_v49 = vpop.f32.mrb[11].mxu1  ;;  %v1076_v50 = vsel %vm1054_vm10, %v1050_v48, -inf }
 0x2e4   :  { %1077 = vmax.xlane.f32.xlu0 %v1076_v50 }
 0x361   :  { %v1057_v51 = vpop.xlane.xlu0 %1056 }
 0x362   :  { %v1079_v52 = vsub.f32 %v518_v25, %v1057_v51 }
 0x364   :  { %v1087_v53 = vmul.f32 1.442695, %v1079_v52 }
 0x365   :  { %v1063_v54 = vpop.xlane.xlu0 %1062  ;;  %v1060_v55 = vpop.xlane.xlu1 %1059 }
 0x366   :  { %5089 = vpow2.f32 %v1087_v53  ;;  %v1081_v56 = vsub.f32 %v670_v27, %v1063_v54  ;;  %v1080_v57 = vsub.f32 %v594_v29, %v1060_v55 }
 0x368   :  { %v1091_v58 = vmul.f32 1.442695, %v1081_v56  ;;  %v1089_v59 = vmul.f32 1.442695, %v1080_v57 }
 0x369   :  { %v1069_v60 = vpop.xlane.xlu1 %1068  ;;  %v1066_v61 = vpop.xlane.xlu0 %1065 }
 0x36a   :  { %5091 = vpow2.f32 %v1091_v58  ;;  %v1083_v62 = vsub.f32 %v822_v33, %v1069_v60  ;;  %v1082_v63 = vsub.f32 %v746_v8, %v1066_v61  ;;  %v1728_v58 = vld [vmem:[#allocation12] sm:$0xff]  ;;  %v1730_v61 = vld [vmem:[#allocation12 + $0x10] sm:$0xff] }
 0x36b   :  { %5093 = vpow2.f32 %v1089_v59  ;;  %v1729_v59 = vld [vmem:[#allocation12 + $0x8] sm:$0xff] }
 0x36c   :  { %v1095_v2 = vmul.f32 1.442695, %v1083_v62  ;;  %v1093_v3 = vmul.f32 1.442695, %v1082_v63  ;;  %v4946_v60 = vpack.c.bf16 %v1729_v59, %v1728_v58  ;;  %v1731_v62 = vld [vmem:[#allocation12 + $0x18] sm:$0xff] }
 0x36d   :  { %v1075_v4 = vpop.xlane.xlu1 %1074  ;;  %v1072_v5 = vpop.xlane.xlu0 %1071 }
 0x36e   :  { %5095 = vpow2.f32 %v1095_v2  ;;  %v1085_v6 = vsub.f32 %v974_v43, %v1075_v4  ;;  %v1084_v12 = vsub.f32 %v898_v41, %v1072_v5 }
 0x36f   :  { %5097 = vpow2.f32 %v1093_v3 }
 0x370   :  { %v5090_v13 = vpop.eup %5089  ;;  %v1099_v14 = vmul.f32 1.442695, %v1085_v6  ;;  %v1097_v18 = vmul.f32 1.442695, %v1084_v12 }
 0x371   :  { %v1078_v19 = vpop.xlane.xlu0 %1077  ;;  %v1103_v20 = vsel %vm1054_vm10, %v5090_v13, 0.0 }
 0x372   :  { %5099 = vpow2.f32 %v1099_v14  ;;  %v1086_v21 = vsub.f32 %v1050_v48, %v1078_v19  ;;  %1104 = vadd.xlane.f32.xlu1 %v1103_v20 }
 0x373   :  { %5101 = vpow2.f32 %v1097_v18 }
 0x374   :  { %v5092_v22 = vpop.eup %5091  ;;  %v1101_v23 = vmul.f32 1.442695, %v1086_v21 }
 0x375   :  { %v5094_v24 = vpop.eup %5093  ;;  %v1109_v25 = vsel %vm1054_vm10, %v5092_v22, 0.0 }
 0x376   :  { %5103 = vpow2.f32 %v1101_v23  ;;  %1110 = vadd.xlane.f32.xlu1 %v1109_v25  ;;  %v1106_v7 = vsel %vm1054_vm10, %v5094_v24, 0.0 }
 0x377   :  { %1107 = vadd.xlane.f32.xlu0 %v1106_v7 }
 0x378   :  { %v5096_v26 = vpop.eup %5095 }
 0x379   :  { %v5098_v27 = vpop.eup %5097  ;;  %v1115_v28 = vsel %vm1054_vm10, %v5096_v26, 0.0 }
 0x37a   :  { %1116 = vadd.xlane.f32.xlu1 %v1115_v28  ;;  %v1112_v29 = vsel %vm1054_vm10, %v5098_v27, 0.0 }
 0x37b   :  { %1113 = vadd.xlane.f32.xlu0 %v1112_v29 }
 0x37c   :  { %v5100_v30 = vpop.eup %5099 }
 0x37d   :  { %v5102_v31 = vpop.eup %5101  ;;  %v1121_v32 = vsel %vm1054_vm10, %v5100_v30, 0.0 }
 0x37e   :  { %1122 = vadd.xlane.f32.xlu1 %v1121_v32  ;;  %v1118_v8 = vsel %vm1054_vm10, %v5102_v31, 0.0 }
 0x37f   :  { %1119 = vadd.xlane.f32.xlu0 %v1118_v8 }
 0x380   :  { %v5104_v33 = vpop.eup %5103 }
 0x381   :  { %v1124_v34 = vsel %vm1054_vm10, %v5104_v33, 0.0 }
 0x383   :  { %1125 = vadd.xlane.f32.xlu0 %v1124_v34 }
 0x3ff   :  { %v1105_v36 = vpop.xlane.xlu1 %1104 }
 0x400   :  { %5105 = vrcp.f32 %v1105_v36 }
 0x403   :  { %v1111_v39 = vpop.xlane.xlu1 %1110 }
 0x404   :  { %5107 = vrcp.f32 %v1111_v39  ;;  %v1108_v40 = vpop.xlane.xlu0 %1107 }
 0x405   :  { %5109 = vrcp.f32 %v1108_v40 }
 0x407   :  { %v1117_v41 = vpop.xlane.xlu1 %1116 }
 0x408   :  { %5111 = vrcp.f32 %v1117_v41  ;;  %v1114_v43 = vpop.xlane.xlu0 %1113 }
 0x409   :  { %5113 = vrcp.f32 %v1114_v43 }
 0x40a   :  { %v5106_v44 = vpop.eup %5105 }
 0x40b   :  { %v1135_v45 = vmul.f32 %v5106_v44, %v5090_v13  ;;  %v1123_v46 = vpop.xlane.xlu1 %1122 }
 0x40c   :  { %5115 = vrcp.f32 %v1123_v46  ;;  %v1120_v47 = vpop.xlane.xlu0 %1119  ;;  %v1930_v46 = vld [vmem:[#allocation12 + $0x28] sm:$0xff] }
 0x40d   :  { %5117 = vrcp.f32 %v1120_v47  ;;  %4627 = vmatmul.mubr.msk.f32.vlgmr.msra.gmra.mrb[6].mxu0 %vm1143_vm11, %v1135_v45  ;;  %v1929_v45 = vld [vmem:[#allocation12 + $0x20] sm:$0xff] }
 0x40e   :  { %v5108_v48 = vpop.eup %5107  ;;  %4635 = vmatpush3.msra.mxu0 %v5577_v9  ;;  %4636 = vmatprep.mubr.msk.f32.mxu0 %vm5392_vm0, %v5393_v1 }
 0x40f   :  { %v5110_v49 = vpop.eup %5109  ;;  %v1137_v50 = vmul.f32 %v5108_v48, %v5092_v22  ;;  %4644 = vmatprep.subr.mxu0 %v5393_v1 }
 0x410   :  { %v1136_v51 = vmul.f32 %v5110_v49, %v5094_v24  ;;  %v1126_v52 = vpop.xlane.xlu0 %1125 }
 0x411   :  { %5119 = vrcp.f32 %v1126_v52  ;;  %4637 = vmatmul.mubr.msk.f32.vlgmr.msra.gmra.mrb[8].mxu0 %vm1143_vm11, %v1137_v50 }
 0x412   :  { %v5112_v53 = vpop.eup %5111  ;;  %4632 = vmatmul.mubr.msk.f32.vlgmr.msra.gmra.mrb[12].mxu1 %vm1143_vm11, %v1136_v51  ;;  %4645 = vmatpush3.msra.mxu0 %v5581_v11 }
 0x413   :  { %v5114_v54 = vpop.eup %5113  ;;  %v1139_v55 = vmul.f32 %v5112_v53, %v5096_v26  ;;  %4640 = vmatpush3.msra.mxu1 %v5579_v10  ;;  %4641 = vmatprep.mubr.msk.f32.mxu1 %vm5392_vm0, %v5393_v1 }
 0x414   :  { %v1138_v9 = vmul.f32 %v5114_v54, %v5098_v27  ;;  %4646 = vmatprep.mubr.msk.f32.mxu0 %vm5392_vm0, %v5393_v1  ;;  %4649 = vmatprep.subr.mxu1 %v5393_v1  ;;  %v4976_v54 = vpack.c.bf16 %v1930_v46, %v1929_v45 }
 0x415   :  { %4647 = vmatmul.mubr.msk.f32.vlgmr.msra.gmra.mrb[10].mxu0 %vm1143_vm11, %v1139_v55  ;;  %4654 = vmatprep.subr.mxu0 %v5393_v1  ;;  %v1931_v55 = vld [vmem:[#allocation12 + $0x30] sm:$0xff] }
 0x416   :  { %v5116_v56 = vpop.eup %5115  ;;  %4642 = vmatmul.mubr.msk.f32.vlgmr.msra.gmra.mrb[14].mxu1 %vm1143_vm11, %v1138_v9  ;;  %4655 = vmatpush3.msra.mxu0 %v5589_v16  ;;  %v1932_v9 = vld [vmem:[#allocation12 + $0x38] sm:$0xff] }
 0x417   :  { %v5118_v11 = vpop.eup %5117  ;;  %v1141_v10 = vmul.f32 %v5116_v56, %v5100_v30  ;;  %4650 = vmatpush3.msra.mxu1 %v5587_v15  ;;  %4651 = vmatprep.mubr.msk.f32.mxu1 %vm5392_vm0, %v5393_v1 }
 0x418   :  { %v1140_v57 = vmul.f32 %v5118_v11, %v5102_v31  ;;  %4656 = vmatprep.mubr.msk.f32.mxu0 %vm5392_vm0, %v5393_v1  ;;  %4659 = vmatprep.subr.mxu1 %v5393_v1 }
 0x419   :  { %4657 = vmatmul.mubr.msk.f32.vlgmr.msra.gmra.mrb[12].mxu0 %vm1143_vm11, %v1141_v10  ;;  %4945 = vmatprep.subr.bf16.mxu0 %v5391_v0 }
 0x41a   :  { %4652 = vmatmul.mubr.msk.f32.vlgmr.msra.gmra.mrb[16].mxu1 %vm1143_vm11, %v1140_v57  ;;  %4672 = vmatprep.mubr.msk.f32.mxu0 %vm5392_vm0, %v5393_v1  ;;  %v4979_v57 = vpack.c.bf16 %v1932_v9, %v1931_v55  ;;  %v2044_v55 = vld [vmem:[#allocation15 + $0xb8] sm:$0xff]  ;;  %v1854_v9 = vld [vmem:[#allocation15 + $0x60] sm:$0xff] }
 0x41b   :  { %v5120_v16 = vpop.eup %5119  ;;  %4660 = vmatpush3.msra.mxu1 %v5591_v17  ;;  %4661 = vmatprep.mubr.msk.f32.mxu1 %vm5392_vm0, %v5393_v1  ;;  %v4949_v17 = vpack.c.bf16 %v1731_v62, %v1730_v61 }
 0x41c   :  { %v1142_v15 = vmul.f32 %v5120_v16, %v5104_v33  ;;  %4951 = vmatprep.subr.bf16.mxu1 %v5391_v0  ;;  %4947 = vmatpush3.bf16.msra.mxu0 %v4946_v60  ;;  %v4378_v16 = vld [vmem:[#allocation14] ss:$0 sm:$0xff]  ;;  %v4380_v60 = vld [vmem:[#allocation14 + $0x1] ss:$0 sm:$0xff] }
 0x41d   :  { %4948 = vmatprep.subr.bf16.mxu0 %v5391_v0 }
 0x41e   :  { %4662 = vmatmul.mubr.msk.f32.vlgmr.msra.gmra.mrb[18].mxu1 %vm1143_vm11, %v1142_v15 }
 0x41f   :  { %4707 = vmatprep.mubr.msk.f32.mxu1 %vm5392_vm0, %v5393_v1 }
 0x420   :  { %4950 = vmatpush3.bf16.msra.mxu0 %v4949_v17 }
 0x421   :  { %4975 = vmatprep.subr.bf16.mxu0 %v5391_v0 }
 0x4e0   :  { %v5770_v63 = vpop.f32.mrb[6].mxu0 }
 0x4e1   :  { %v4628_v2 = vpop.f32.mrb[7].mxu0  ;;  %v1941_v3 = vrot.slane %v5770_v63, 1 }
 0x4e2   :  { %v1842_v2 = vld [vmem:[#allocation15] sm:$0xff] }
 0x4e4   :  { %v5773_v4 = vpop.f32.mrb[8].mxu0 }
 0x4e5   :  { %v5775_v5 = vpop.f32.mrb[12].mxu1  ;;  %v1749_v6 = vrot.slane %v5773_v4, 6  ;;  %v1943_v12 = vrot.slane %v5773_v4, 7  ;;  %v4638_v13 = vpop.f32.mrb[9].mxu0 }
 0x4e6   :  { %v1747_v14 = vrot.slane %v5775_v5, 7  ;;  %v1942_v18 = vsel %vm221_vm2, %v5775_v5, %v1941_v3  ;;  %v4633_v19 = vpop.f32.mrb[13].mxu1  ;;  %v1843_v3 = vld [vmem:[#allocation15 + $0x8] sm:$0xff]  ;;  %v1845_v13 = vld [vmem:[#allocation15 + $0x18] sm:$0xff] }
 0x4e7   :  { %v1944_v20 = vsel %vm223_vm3, %v1943_v12, %v1942_v18  ;;  %v4952_v12 = vpack.c.bf16 %v1843_v3, %v1842_v2  ;;  %v2038_v18 = vld [vmem:[#allocation15 + $0x88] sm:$0xff]  ;;  %v2049_v2 = vld [vmem:[#allocation15 + $0xe0] sm:$0xff] }
 0x4e8   :  { %v1748_v21 = vsel %vm221_vm2, %v1747_v14, %v5770_v63  ;;  %v5785_v22 = vpop.f32.mrb[10].mxu0  ;;  %v2037_v14 = vld [vmem:[#allocation15 + $0x80] sm:$0xff]  ;;  %v2050_v3 = vld [vmem:[#allocation15 + $0xe8] sm:$0xff] }
 0x4e9   :  { %v1750_v23 = vsel %vm223_vm3, %v1749_v6, %v1748_v21  ;;  %v5788_v24 = vpop.f32.mrb[14].mxu1  ;;  %v1753_v25 = vrot.slane %v5785_v22, 4  ;;  %v1947_v7 = vrot.slane %v5785_v22, 5  ;;  %v4648_v26 = vpop.f32.mrb[11].mxu0  ;;  %v1844_v6 = vld [vmem:[#allocation15 + $0x10] sm:$0xff]  ;;  %4953 = vmatpush3.bf16.msra.mxu1 %v4952_v12 }
 0x4ea   :  { %v1751_v27 = vrot.slane %v5788_v24, 5  ;;  %v1945_v28 = vrot.slane %v5788_v24, 6  ;;  %v4643_v29 = vpop.f32.mrb[15].mxu1  ;;  %v4955_v19 = vpack.c.bf16 %v1845_v13, %v1844_v6  ;;  %v2039_v21 = vld [vmem:[#allocation15 + $0x90] sm:$0xff]  ;;  %4954 = vmatprep.subr.bf16.mxu1 %v5391_v0  ;;  %v5000_v6 = vpack.c.bf16 %v2050_v3, %v2049_v2  ;;  %v2052_v13 = vld [vmem:[#allocation15 + $0xf8] sm:$0xff] }
 0x4eb   :  { %v2051_v12 = vld [vmem:[#allocation15 + $0xf0] sm:$0xff] }
 0x4ec   :  { %v1752_v30 = vsel %vm225_vm4, %v1751_v27, %v1750_v23  ;;  %v1946_v31 = vsel %vm225_vm4, %v1945_v28, %v1944_v20  ;;  %v5796_v32 = vpop.f32.mrb[12].mxu0  ;;  %v4982_v20 = vpack.c.bf16 %v2038_v18, %v2037_v14  ;;  %v2040_v23 = vld [vmem:[#allocation15 + $0x98] sm:$0xff]  ;;  %v2041_v27 = vld [vmem:[#allocation15 + $0xa0] sm:$0xff]  ;;  %v2042_v28 = vld [vmem:[#allocation15 + $0xa8] sm:$0xff]  ;;  %v5003_v14 = vpack.c.bf16 %v2052_v13, %v2051_v12 }
 0x4ed   :  { %v1754_v8 = vsel %vm227_vm5, %v1753_v25, %v1752_v30  ;;  %v1948_v33 = vsel %vm227_vm5, %v1947_v7, %v1946_v31  ;;  %v5800_v34 = vpop.f32.mrb[16].mxu1  ;;  %v4658_v36 = vpop.f32.mrb[13].mxu0  ;;  %v1757_v41 = vrot.slane %v5796_v32, 2  ;;  %v1951_v43 = vrot.slane %v5796_v32, 3  ;;  %v1846_v25 = vld [vmem:[#allocation15 + $0x20] sm:$0xff]  ;;  %v1847_v7 = vld [vmem:[#allocation15 + $0x28] sm:$0xff]  ;;  %4956 = vmatpush3.bf16.msra.mxu1 %v4955_v19 }
 0x4ee   :  { %v1755_v39 = vrot.slane %v5800_v34, 3  ;;  %v1949_v40 = vrot.slane %v5800_v34, 4  ;;  %v4653_v44 = vpop.f32.mrb[17].mxu1  ;;  %v4985_v26 = vpack.c.bf16 %v2040_v23, %v2039_v21  ;;  %v4958_v29 = vpack.c.bf16 %v1847_v7, %v1846_v25  ;;  %4957 = vmatprep.subr.bf16.mxu1 %v5391_v0  ;;  %v1848_v30 = vld [vmem:[#allocation15 + $0x30] sm:$0xff]  ;;  %v1849_v31 = vld [vmem:[#allocation15 + $0x38] sm:$0xff]  ;;  %v1850_v36 = vld [vmem:[#allocation15 + $0x40] sm:$0xff] }
 0x4ef   :  { %v5846_v18 = vld [vmem:[#allocation6] sm:$0xff]  ;;  %v5848_v19 = vld [vmem:[#allocation6 + $0x8] sm:$0xff]  ;;  %v5856_v25 = vld [vmem:[#allocation6 + $0x18] sm:$0xff] }
 0x4f0   :  { %v1756_v47 = vsel %vm229_vm6, %v1755_v39, %v1754_v8  ;;  %v1950_v50 = vsel %vm229_vm6, %v1949_v40, %v1948_v33  ;;  %v4988_v8 = vpack.c.bf16 %v2042_v28, %v2041_v27  ;;  %v4961_v33 = vpack.c.bf16 %v1849_v31, %v1848_v30  ;;  %v1851_v39 = vld [vmem:[#allocation15 + $0x48] sm:$0xff] }
 0x4f1   :  { %v5807_v48 = vpop.f32.mrb[18].mxu1  ;;  %v1758_v49 = vsel %vm231_vm7, %v1757_v41, %v1756_v47  ;;  %v1952_v56 = vsel %vm231_vm7, %v1951_v43, %v1950_v50  ;;  %4959 = vmatpush3.bf16.msra.mxu1 %v4958_v29  ;;  %v4964_v40 = vpack.c.bf16 %v1851_v39, %v1850_v36  ;;  %v2241_v21 = vsel %vm143_vm1, %v5846_v18, 0.0  ;;  %v5860_v28 = vld [vmem:[#allocation6 + $0x20] sm:$0xff] }
 0x4f2   :  { %v1759_v51 = vrot.slane %v5807_v48, 1  ;;  %v1953_v52 = vrot.slane %v5807_v48, 2  ;;  %v4663_v53 = vpop.f32.mrb[19].mxu1  ;;  %4960 = vmatprep.subr.bf16.mxu1 %v5391_v0  ;;  %v2248_v23 = vsel %vm143_vm1, %v5848_v19, 0.0  ;;  %v2242_v7 = vrot.slane %v2241_v21, 4 }
 0x4f3   :  { %v2043_v53 = vld [vmem:[#allocation15 + $0xb0] sm:$0xff]  ;;  %v2262_v30 = vsel %vm143_vm1, %v5856_v25, 0.0  ;;  %v2269_v39 = vsel %vm143_vm1, %v5860_v28, 0.0 }
 0x4f4   :  { %v1760_v11 = vsel %vm233_vm8, %v1759_v51, %v1758_v49  ;;  %v1954_v10 = vsel %vm233_vm8, %v1953_v52, %v1952_v56  ;;  %v1852_v51 = vld [vmem:[#allocation15 + $0x50] sm:$0xff]  ;;  %v1853_v52 = vld [vmem:[#allocation15 + $0x58] sm:$0xff]  ;;  %v1855_v56 = vld [vmem:[#allocation15 + $0x68] sm:$0xff]  ;;  %v2243_v31 = vadd.f32 %v2242_v7, %v2241_v21  ;;  %v2263_v36 = vrot.slane %v2262_v30, 4 }
 0x4f5   :  { %4673 = vmatmul.mubr.msk.f32.vlgmr.msra.gmra.mrb[14].mxu0 %vm143_vm1, %v1760_v11  ;;  %4962 = vmatpush3.bf16.msra.mxu1 %v4961_v33  ;;  %v4991_v11 = vpack.c.bf16 %v2044_v55, %v2043_v53  ;;  %v5864_v33 = vld [vmem:[#allocation6 + $0x28] sm:$0xff] }
 0x4f6   :  { %4977 = vmatpush3.bf16.msra.mxu0 %v4976_v54  ;;  %4718 = vmatprep.mubr.msk.f32.mxu0 %vm5392_vm0, %v5393_v1  ;;  %v4967_v54 = vpack.c.bf16 %v1853_v52, %v1852_v51  ;;  %v5872_v52 = vld [vmem:[#allocation6 + $0x38] sm:$0xff] }
 0x4f7   :  { %4978 = vmatprep.subr.bf16.mxu0 %v5391_v0  ;;  %4963 = vmatprep.subr.bf16.mxu1 %v5391_v0 }
 0x4f9   :  { %4965 = vmatpush3.bf16.msra.mxu1 %v4964_v40 }
 0x4fa   :  { %4980 = vmatpush3.bf16.msra.mxu0 %v4979_v57  ;;  %4966 = vmatprep.subr.bf16.mxu1 %v5391_v0  ;;  %v2046_v57 = vld [vmem:[#allocation15 + $0xc8] sm:$0xff] }
 0x4fb   :  { %4981 = vmatprep.subr.bf16.mxu0 %v5391_v0 }
 0x4fd   :  { %4719 = vmatmul.mubr.msk.f32.vlgmr.msra.gmra.mrb[16].mxu0 %vm143_vm1, %v1954_v10  ;;  %v2045_v10 = vld [vmem:[#allocation15 + $0xc0] sm:$0xff]  ;;  %4968 = vmatpush3.bf16.msra.mxu1 %v4967_v54 }
 0x4fe   :  { %4753 = vmatprep.mubr.msk.f32.mxu0 %vm5392_vm0, %v5393_v1  ;;  %4983 = vmatpush3.bf16.msra.mxu0 %v4982_v20  ;;  %v5850_v20 = vld [vmem:[#allocation6 + $0x10] sm:$0xff] }
 0x4ff   :  { %4984 = vmatprep.subr.bf16.mxu0 %v5391_v0  ;;  %4969 = vmatprep.subr.bf16.mxu1 %v5391_v0  ;;  %v2255_v27 = vsel %vm143_vm1, %v5850_v20, 0.0 }
 0x500   :  { %v2256_v29 = vrot.slane %v2255_v27, 4 }
 0x502   :  { %4986 = vmatpush3.bf16.msra.mxu0 %v4985_v26  ;;  %v2249_v26 = vrot.slane %v2248_v23, 4  ;;  %v2257_v40 = vadd.f32 %v2256_v29, %v2255_v27 }
 0x503   :  { %4987 = vmatprep.subr.bf16.mxu0 %v5391_v0 }
 0x504   :  { %v2258_v51 = vrot.slane %v2257_v40, 2 }
 0x506   :  { %4989 = vmatpush3.bf16.msra.mxu0 %v4988_v8  ;;  %v2250_v8 = vadd.f32 %v2249_v26, %v2248_v23 }
 0x507   :  { %4990 = vmatprep.subr.bf16.mxu0 %v5391_v0 }
 0x50a   :  { %4992 = vmatpush3.bf16.msra.mxu0 %v4991_v11 }
 0x50b   :  { %4993 = vmatprep.subr.bf16.mxu0 %v5391_v0 }
 0x5c8   :  { %v1829_v15 = vpop.f32.mrb[14].mxu0 }
 0x5c9   :  { %v1830_v58 = vadd.f32 %v4378_v16, %v1829_v15  ;;  %v4674_v59 = vpop.f32.mrb[15].mxu0  ;;  %v4970_v16 = vpack.c.bf16 %v1855_v56, %v1854_v9  ;;  %v4994_v15 = vpack.c.bf16 %v2046_v57, %v2045_v10  ;;  %v2259_v10 = vadd.f32 %v2258_v51, %v2257_v40 }
 0x5ca   :  { %v1857_v59 = vld [vmem:[#allocation15 + $0x78] sm:$0xff] }
 0x5cb   :  { %1833 = vmax.xlane.f32.xlu1 %v1830_v58  ;;  %4971 = vmatpush3.bf16.msra.mxu1 %v4970_v16  ;;  %v2290_v16 = vsel %vm143_vm1, %v5872_v52, 0.0 }
 0x5cc   :  { %4995 = vmatpush3.bf16.msra.mxu0 %v4994_v15  ;;  %4972 = vmatprep.subr.bf16.mxu1 %v5391_v0 }
 0x5cd   :  { %4996 = vmatprep.subr.bf16.mxu0 %v5391_v0 }
 0x5d0   :  { %v2023_v61 = vpop.f32.mrb[16].mxu0 }
 0x5d1   :  { %v2024_v62 = vadd.f32 %v4380_v60, %v2023_v61  ;;  %v4720_v17 = vpop.f32.mrb[17].mxu0  ;;  %v2047_v60 = vld [vmem:[#allocation15 + $0xd0] sm:$0xff] }
 0x5d3   :  { %2027 = vmax.xlane.f32.xlu1 %v2024_v62 }
 0x658   :  { %v1834_v41 = vpop.xlane.xlu1 %1833 }
 0x659   :  { %v1835_v43 = vsub.f32 %v1830_v58, %v1834_v41  ;;  %v1856_v58 = vld [vmem:[#allocation15 + $0x70] sm:$0xff]  ;;  %v2244_v41 = vrot.slane %v2243_v31, 2 }
 0x65a   :  { %v4973_v61 = vpack.c.bf16 %v1857_v59, %v1856_v58 }
 0x65b   :  { %v1836_v44 = vmul.f32 1.442695, %v1835_v43  ;;  %v2251_v43 = vrot.slane %v2250_v8, 2  ;;  %v2245_v53 = vadd.f32 %v2244_v41, %v2243_v31 }
 0x65c   :  { %4974 = vmatpush3.bf16.msra.mxu1 %v4973_v61 }
 0x65d   :  { %5121 = vpow2.f32 %v1836_v44  ;;  %5005 = vmatprep.subr.bf16.mxu1 %v5391_v0  ;;  %v5868_v44 = vld [vmem:[#allocation6 + $0x30] sm:$0xff]  ;;  %v2252_v54 = vadd.f32 %v2251_v43, %v2250_v8  ;;  %v2246_v15 = vrot.slane %v2245_v53, 1 }
 0x65e   :  { %v2283_v9 = vsel %vm143_vm1, %v5868_v44, 0.0 }
 0x65f   :  { %v2284_v57 = vrot.slane %v2283_v9, 4  ;;  %v2253_v58 = vrot.slane %v2252_v54, 1  ;;  %v2247_v3 = vadd.f32 %v2246_v15, %v2245_v53 }
 0x660   :  { %v2028_v45 = vpop.xlane.xlu1 %2027 }
 0x661   :  { %v2029_v46 = vsub.f32 %v2024_v62, %v2028_v45  ;;  %v2048_v62 = vld [vmem:[#allocation15 + $0xd8] sm:$0xff]  ;;  %v2270_v45 = vrot.slane %v2269_v39, 4  ;;  %v2285_v2 = vadd.f32 %v2284_v57, %v2283_v9  ;;  %v2297_v27 = vmul.f32 0.125, %v2247_v3  ;;  %v2307_v57 = vld [vmem:[#allocation11 + $0x28] sm:$0xff] }
 0x662   :  { %v4997_v17 = vpack.c.bf16 %v2048_v62, %v2047_v60  ;;  %v2291_v62 = vrot.slane %v2290_v16, 4 }
 0x663   :  { %v2030_v47 = vmul.f32 1.442695, %v2029_v46  ;;  %v2276_v46 = vsel %vm143_vm1, %v5864_v33, 0.0  ;;  %v2271_v56 = vadd.f32 %v2270_v45, %v2269_v39  ;;  %v2286_v7 = vrot.slane %v2285_v2, 2 }
 0x664   :  { %4998 = vmatpush3.bf16.msra.mxu0 %v4997_v17  ;;  %v2277_v55 = vrot.slane %v2276_v46, 4  ;;  %v2260_v17 = vrot.slane %v2259_v10, 1  ;;  %v2292_v21 = vadd.f32 %v2291_v62, %v2290_v16 }
 0x665   :  { %5123 = vpow2.f32 %v2030_v47  ;;  %4999 = vmatprep.subr.bf16.mxu0 %v5391_v0  ;;  %v2264_v47 = vadd.f32 %v2263_v36, %v2262_v30  ;;  %v2272_v60 = vrot.slane %v2271_v56, 2  ;;  %v2287_v39 = vadd.f32 %v2286_v7, %v2285_v2  ;;  %v2309_v2 = vld [vmem:[#allocation11 + $0x38] sm:$0xff] }
 0x666   :  { %v2278_v59 = vadd.f32 %v2277_v55, %v2276_v46  ;;  %v2261_v23 = vadd.f32 %v2260_v17, %v2259_v10  ;;  %v2293_v8 = vrot.slane %v2292_v21, 2  ;;  %v2306_v10 = vld [vmem:[#allocation11 + $0x20] sm:$0xff]  ;;  %v2308_v17 = vld [vmem:[#allocation11 + $0x30] sm:$0xff]  ;;  %v2132_v7 = vmul.f32 0.3, %v5775_v5 }
 0x667   :  { %v5832_v49 = vpop.eup %5121  ;;  %v2265_v11 = vrot.slane %v2264_v47, 2  ;;  %v2273_v13 = vadd.f32 %v2272_v60, %v2271_v56  ;;  %v2288_v51 = vrot.slane %v2287_v39, 1  ;;  %v5006_v60 = vpack.c.bf16 %v2307_v57, %v2306_v10 }
 0x668   :  { %1838 = vadd.xlane.f32.xlu0 %v5832_v49  ;;  %5001 = vmatpush3.bf16.msra.mxu0 %v5000_v6  ;;  %v2254_v6 = vadd.f32 %v2253_v58, %v2252_v54  ;;  %v2279_v12 = vrot.slane %v2278_v59, 2  ;;  %v2299_v40 = vmul.f32 0.125, %v2261_v23  ;;  %v2294_v46 = vadd.f32 %v2293_v8, %v2292_v21 }
 0x669   :  { %5002 = vmatprep.subr.bf16.mxu0 %v5391_v0  ;;  %v2266_v61 = vadd.f32 %v2265_v11, %v2264_v47  ;;  %v2274_v30 = vrot.slane %v2273_v13, 1  ;;  %v2289_v16 = vadd.f32 %v2288_v51, %v2287_v39  ;;  %v2148_v8 = vrot.slane %v2132_v7, 1 }
 0x66a   :  { %v2280_v26 = vadd.f32 %v2279_v12, %v2278_v59  ;;  %v2298_v29 = vmul.f32 0.125, %v2254_v6  ;;  %v2295_v9 = vrot.slane %v2294_v46, 1  ;;  %v5009_v12 = vpack.c.bf16 %v2309_v2, %v2308_v17 }
 0x66b   :  { %v2275_v45 = vadd.f32 %v2274_v30, %v2273_v13  ;;  %v2303_v3 = vmul.f32 0.125, %v2289_v16  ;;  %v2134_v30 = vmul.f32 0.3, %v5788_v24  ;;  %v2135_v39 = vmul.f32 0.3, %v5785_v22 }
 0x66c   :  { %5004 = vmatpush3.bf16.msra.mxu0 %v5003_v14  ;;  %v2267_v14 = vrot.slane %v2266_v61, 1  ;;  %v2281_v41 = vrot.slane %v2280_v26, 1  ;;  %v2318_v43 = vsel %vm221_vm2, %v2298_v29, %v2297_v27 }
 0x66d   :  { %4777 = vmatprep.subr.mxu0 %v5393_v1  ;;  %v2319_v53 = vsel %vm223_vm3, %v2299_v40, %v2318_v43  ;;  %v2301_v55 = vmul.f32 0.125, %v2275_v45  ;;  %v2136_v40 = vmul.f32 0.3, %v5800_v34  ;;  %v2124_v43 = vmul.f32 0.7, %v5775_v5 }
 0x66e   :  { %v2268_v31 = vadd.f32 %v2267_v14, %v2266_v61  ;;  %v2282_v54 = vadd.f32 %v2281_v41, %v2280_v26  ;;  %v2296_v61 = vadd.f32 %v2295_v9, %v2294_v46  ;;  %v2133_v26 = vmul.f32 0.3, %v5773_v4 }
 0x66f   :  { %v5835_v50 = vpop.eup %5123  ;;  %v2123_v41 = vmul.f32 0.7, %v5770_v63  ;;  %v2125_v45 = vmul.f32 0.7, %v5773_v4  ;;  %v2150_v46 = vrot.slane %v2134_v30, 1  ;;  %v2164_v51 = vadd.f32 %v2148_v8, %v2124_v43 }
 0x670   :  { %2032 = vadd.xlane.f32.xlu0 %v5835_v50  ;;  %v2300_v47 = vmul.f32 0.125, %v2268_v31  ;;  %v2302_v15 = vmul.f32 0.125, %v2282_v54  ;;  %v2304_v13 = vmul.f32 0.125, %v2296_v61  ;;  %v2152_v9 = vrot.slane %v2136_v40, 1 }
 0x671   :  { %v2130_v30 = vmul.f32 0.7, %v5807_v48 }
 0x672   :  { %v2320_v56 = vsel %vm225_vm4, %v2300_v47, %v2319_v53  ;;  %v2126_v53 = vmul.f32 0.7, %v5788_v24  ;;  %v2138_v24 = vmul.f32 0.3, %v5807_v48 }
 0x673   :  { %v2321_v58 = vsel %vm227_vm5, %v2301_v55, %v2320_v56  ;;  %v2151_v55 = vrot.slane %v2135_v39, 1  ;;  %v2137_v56 = vmul.f32 0.3, %v5796_v32 }
 0x674   :  { %v2322_v6 = vsel %vm229_vm6, %v2302_v15, %v2321_v58  ;;  %v2166_v4 = vadd.f32 %v2150_v46, %v2126_v53 }
 0x675   :  { %v2323_v14 = vsel %vm231_vm7, %v2303_v3, %v2322_v6 }
 0x6f5   :  { %v1839_v36 = vpop.xlane.xlu0 %1838 }
 0x6f6   :  { %5125 = vrcp.f32 %v1839_v36  ;;  %v2149_v36 = vrot.slane %v2133_v26, 1 }
 0x6f8   :  { %v2165_v54 = vadd.f32 %v2149_v36, %v2125_v45 }
 0x6fd   :  { %v2033_v11 = vpop.xlane.xlu0 %2032 }
 0x6fe   :  { %5127 = vrcp.f32 %v2033_v11 }
 0x700   :  { %v5126_v59 = vpop.eup %5125 }
 0x701   :  { %v1841_v62 = vmul.f32 %v5126_v59, %v5832_v49  ;;  %v2324_v49 = vsel %vm233_vm8, %v2304_v13, %v2323_v14  ;;  %v2127_v59 = vmul.f32 0.7, %v5785_v22  ;;  %v2153_v13 = vrot.slane %v2137_v56, 1 }
 0x703   :  { %4708 = vmatmul.mubr.f32.vlgmr.msra.gmra.mrb[20].mxu1 %v1841_v62  ;;  %v2167_v3 = vadd.f32 %v2151_v55, %v2127_v59 }
 0x704   :  { %5007 = vmatpush3.bf16.msra.mxu1 %v5006_v60  ;;  %4764 = vmatprep.mubr.msk.f32.mxu1 %vm5392_vm0, %v5393_v1  ;;  %v2128_v60 = vmul.f32 0.7, %v5800_v34 }
 0x705   :  { %5008 = vmatprep.subr.bf16.mxu1 %v5391_v0 }
 0x706   :  { %v2168_v6 = vadd.f32 %v2152_v9, %v2128_v60 }
 0x708   :  { %v5128_v21 = vpop.eup %5127  ;;  %5010 = vmatpush3.bf16.msra.mxu1 %v5009_v12  ;;  %v2129_v12 = vmul.f32 0.7, %v5796_v32 }
 0x709   :  { %v2035_v23 = vmul.f32 %v5128_v21, %v5835_v50  ;;  %4767 = vmatprep.subr.mxu1 %v5393_v1  ;;  %v2131_v50 = vmul.f32 0.3, %v5770_v63 }
 0x70a   :  { %v2169_v36 = vadd.f32 %v2153_v13, %v2129_v12 }
 0x70b   :  { %4754 = vmatmul.mubr.f32.vlgmr.msra.gmra.mrb[18].mxu0 %v2035_v23  ;;  %4765 = vmatmul.mubr.msk.f32.vlgmr.msra.gmra.mrb[22].mxu1 %vm143_vm1, %v2324_v49  ;;  %v2147_v31 = vrot.slane %v2131_v50, 1  ;;  %v2154_v49 = vrot.slane %v2138_v24, 1 }
 0x70c   :  { %4769 = vmatprep.mubr.msk.f32.mxu1 %vm5392_vm0, %v5393_v1  ;;  %4778 = vmatpush3.xpose.msk.msra.mxu0 %vm143_vm1, %v5850_v20 }
 0x70d   :  { %4779 = vmatprep.mubr.msk.f32.mxu0 %vm5392_vm0, %v5393_v1  ;;  %4787 = vmatprep.subr.mxu0 %v5393_v1  ;;  %v2163_v47 = vadd.f32 %v2147_v31, %v2123_v41  ;;  %v2170_v48 = vadd.f32 %v2154_v49, %v2130_v30 }
 0x711   :  { %4768 = vmatpush3.xpose.msk.msra.mxu1 %vm143_vm1, %v5846_v18 }
 0x712   :  { %4772 = vmatprep.subr.mxu1 %v5393_v1 }
 0x7d6   :  { %v1924_v27 = vpop.f32.mrb[20].mxu1 }
 0x7d7   :  { %v4709_v29 = vpop.f32.mrb[21].mxu1  ;;  %v2171_v57 = vmul.f32 0.7, %v1924_v27 }
 0x7de   :  { %v2119_v11 = vpop.f32.mrb[18].mxu0  ;;  %v2393_v10 = vpop.f32.mrb[22].mxu1 }
 0x7df   :  { %v2172_v16 = vmul.f32 0.3, %v2119_v11  ;;  %v2398_v15 = vcombine.high %v2393_v10, %v2393_v10  ;;  %v2405_v63 = vrot.slane %v2393_v10, %v5627_v38  ;;  %v4755_v5 = vpop.f32.mrb[19].mxu0  ;;  %v4766_v58 = vpop.f32.mrb[23].mxu1 }
 0x7e1   :  { %v5917_v61 = vadd.f32 %v2172_v16, %v2171_v57  ;;  %v2412_v62 = vrot.slane %v2398_v15, %v5627_v38  ;;  %v2413_v17 = vcombine.high %v2405_v63, %v2405_v63  ;;  %v2421_v2 = vrot.slane %v2405_v63, %v5627_v38 }
 0x7e3   :  { %v2414_v14 = vcombine.high %v2412_v62, %v2412_v62  ;;  %v2428_v21 = vrot.slane %v2412_v62, %v5627_v38  ;;  %v2435_v22 = vrot.slane %v2413_v17, %v5627_v38  ;;  %2455 = vst.msk [vmem:[#allocation2] sm:$0x1] %vm365_vm9, %v2421_v2  ;;  %v2466_v34 = vrot.slane %v2421_v2, %v5631_v42 }
 0x7e4   :  { %v2443_v23 = vcombine.high %v2421_v2, %v2421_v2  ;;  %v2176_v50 = vrot.slane %v5917_v61, 1  ;;  %v2177_v7 = vrot.slane %v5917_v61, 2  ;;  %v2178_v29 = vrot.slane %v5917_v61, 3 }
 0x7e5   :  { %v2442_v26 = vrot.slane %v2414_v14, %v5627_v38  ;;  %2456 = vst.msk [vmem:[#allocation2 + $0x2] sm:$0x1] %vm365_vm9, %v2435_v22  ;;  %2459 = vst.msk [vmem:[#allocation2 + $0x8] sm:$0x1] %vm365_vm9, %v2428_v21  ;;  %2495 = vrot.lane.b32.xlu1 %v2466_v34, %s5395_s7  ;;  %v2470_v32 = vrot.slane %v2435_v22, %v5631_v42  ;;  %v2445_v27 = vcombine.high %v2435_v22, %v2435_v22 }
 0x7e6   :  { %2457 = vst.msk [vmem:[#allocation2 + $0x4] sm:$0x1] %vm365_vm9, %v2443_v23  ;;  %v2444_v31 = vcombine.high %v2428_v21, %v2428_v21  ;;  %v2179_v8 = vrot.slane %v5917_v61, 4  ;;  %v2180_v38 = vrot.slane %v5917_v61, 5  ;;  %v2474_v39 = vrot.slane %v2443_v23, %v5631_v42 }
 0x7e7   :  { %2460 = vst.msk [vmem:[#allocation2 + $0xa] sm:$0x1] %vm365_vm9, %v2442_v26  ;;  %2497 = vrot.lane.b32.xlu0 %v2470_v32, %s5395_s7  ;;  %2458 = vst.msk [vmem:[#allocation2 + $0x6] sm:$0x1] %vm365_vm9, %v2445_v27  ;;  %v2446_v40 = vcombine.high %v2442_v26, %v2442_v26  ;;  %v2181_v41 = vrot.slane %v5917_v61, 6  ;;  %v2182_v43 = vrot.slane %v5917_v61, 7  ;;  %v2191_v45 = vmul.f32 %v5917_v61, %v2163_v47 }
 0x7e8   :  { %2461 = vst.msk [vmem:[#allocation2 + $0xc] sm:$0x1] %vm365_vm9, %v2444_v31  ;;  %v2192_v46 = vmul.f32 %v2176_v50, %v2164_v51  ;;  %v2482_v53 = vrot.slane %v2428_v21, %v5631_v42  ;;  %v2193_v55 = vmul.f32 %v2177_v7, %v2165_v54  ;;  %v2194_v9 = vmul.f32 %v2178_v29, %v2166_v4 }
 0x7e9   :  { %2499 = vrot.lane.b32.xlu1 %v2474_v39, %s5395_s7  ;;  %2462 = vst.msk [vmem:[#allocation2 + $0xe] sm:$0x1] %vm365_vm9, %v2446_v40  ;;  %v2195_v56 = vmul.f32 %v2179_v8, %v2167_v3  ;;  %v2196_v11 = vmul.f32 %v2180_v38, %v2168_v6  ;;  %v2197_v10 = vmul.f32 %v2181_v41, %v2169_v36 }
 0x7ea   :  { %v2198_v57 = vmul.f32 %v2182_v43, %v2170_v48  ;;  %v2207_v16 = vrot.slane %v2192_v46, 7  ;;  %v2478_v15 = vrot.slane %v2445_v27, %v5631_v42  ;;  %v2209_v63 = vrot.slane %v2193_v55, 6 }
 0x7eb   :  { %2503 = vrot.lane.b32.xlu0 %v2482_v53, %s5395_s7  ;;  %v2211_v51 = vrot.slane %v2194_v9, 5  ;;  %v2490_v5 = vrot.slane %v2444_v31, %v5631_v42  ;;  %v2213_v58 = vrot.slane %v2195_v56, 4  ;;  %v2215_v59 = vrot.slane %v2196_v11, 3 }
 0x7ec   :  { %v2208_v47 = vsel %vm221_vm2, %v2207_v16, %v2191_v45  ;;  %v2486_v60 = vrot.slane %v2442_v26, %v5631_v42  ;;  %v2217_v62 = vrot.slane %v2197_v10, 2  ;;  %v2219_v2 = vrot.slane %v2198_v57, 1 }
 0x7ed   :  { %2501 = vrot.lane.b32.xlu1 %v2478_v15, %s5395_s7  ;;  %v2210_v54 = vsel %vm223_vm3, %v2209_v63, %v2208_v47  ;;  %v2494_v12 = vrot.slane %v2446_v40, %v5631_v42 }
 0x7ee   :  { %v2212_v4 = vsel %vm225_vm4, %v2211_v51, %v2210_v54 }
 0x7ef   :  { %2507 = vrot.lane.b32.xlu0 %v2490_v5, %s5395_s7  ;;  %v2214_v24 = vsel %vm227_vm5, %v2213_v58, %v2212_v4 }
 0x7f0   :  { %v2216_v17 = vsel %vm229_vm6, %v2215_v59, %v2214_v24 }
 0x7f1   :  { %2505 = vrot.lane.b32.xlu1 %v2486_v60, %s5395_s7  ;;  %v2218_v3 = vsel %vm231_vm7, %v2217_v62, %v2216_v17 }
 0x7f2   :  { %v5963_v6 = vsel %vm233_vm8, %v2219_v2, %v2218_v3 }
 0x7f5   :  { %2509 = vrot.lane.b32.xlu1 %v2494_v12, %s5395_s7 }
 0x857   :  { %v2496_v13 = vpop.permute.xlu1 %2495 }
 0x858   :  { %2519 = vst.msk [vmem:[#allocation2 + $0x1] sm:$0x1] %vm365_vm9, %v2496_v13 }
 0x859   :  { %v2498_v14 = vpop.permute.xlu0 %2497 }
 0x85a   :  { %2520 = vst.msk [vmem:[#allocation2 + $0x3] sm:$0x1] %vm365_vm9, %v2498_v14 }
 0x85b   :  { %v2500_v21 = vpop.permute.xlu1 %2499 }
 0x85c   :  { %2521 = vst.msk [vmem:[#allocation2 + $0x5] sm:$0x1] %vm365_vm9, %v2500_v21 }
 0x85d   :  { %v2504_v22 = vpop.permute.xlu0 %2503 }
 0x85e   :  { %2523 = vst.msk [vmem:[#allocation2 + $0x9] sm:$0x1] %vm365_vm9, %v2504_v22 }
 0x85f   :  { %v2502_v34 = vpop.permute.xlu1 %2501  ;;  %v2527_v49 = vld [vmem:[#allocation2] sm:$0x3] }
 0x860   :  { %2522 = vst.msk [vmem:[#allocation2 + $0x7] sm:$0x1] %vm365_vm9, %v2502_v34  ;;  %4770 = vmatmul.mubr.msk.f32.vlgmr.msra.gmra.mrb[24].mxu1 %vm143_vm1, %v2527_v49 }
 0x861   :  { %4773 = vmatpush3.xpose.msk.msra.mxu1 %vm143_vm1, %v5848_v19  ;;  %v2508_v42 = vpop.permute.xlu0 %2507  ;;  %4774 = vmatprep.mubr.msk.f32.mxu1 %vm5392_vm0, %v5393_v1  ;;  %v2528_v50 = vld [vmem:[#allocation2 + $0x2] sm:$0x3] }
 0x862   :  { %2525 = vst.msk [vmem:[#allocation2 + $0xd] sm:$0x1] %vm365_vm9, %v2508_v42  ;;  %4782 = vmatprep.subr.mxu1 %v5393_v1 }
 0x863   :  { %v2506_v23 = vpop.permute.xlu1 %2505  ;;  %v2529_v7 = vld [vmem:[#allocation2 + $0x4] sm:$0x3] }
 0x864   :  { %2524 = vst.msk [vmem:[#allocation2 + $0xb] sm:$0x1] %vm365_vm9, %v2506_v23  ;;  %4775 = vmatmul.mubr.msk.f32.vlgmr.msra.gmra.mrb[26].mxu1 %vm143_vm1, %v2528_v50  ;;  %4780 = vmatmul.mubr.msk.f32.vlgmr.msra.gmra.mrb[20].mxu0 %vm143_vm1, %v2529_v7 }
 0x865   :  { %4783 = vmatpush3.xpose.msk.msra.mxu1 %vm143_vm1, %v5856_v25  ;;  %4788 = vmatpush3.xpose.msk.msra.mxu0 %vm143_vm1, %v5860_v28  ;;  %v2531_v27 = vld [vmem:[#allocation2 + $0x8] sm:$0x3] }
 0x866   :  { %4784 = vmatprep.mubr.msk.f32.mxu1 %vm5392_vm0, %v5393_v1  ;;  %4789 = vmatprep.mubr.msk.f32.mxu0 %vm5392_vm0, %v5393_v1 }
 0x867   :  { %4792 = vmatprep.subr.mxu1 %v5393_v1  ;;  %v2510_v26 = vpop.permute.xlu1 %2509  ;;  %v2530_v32 = vld [vmem:[#allocation2 + $0x6] sm:$0x3]  ;;  %4797 = vmatprep.subr.mxu0 %v5393_v1 }
 0x868   :  { %2526 = vst.msk [vmem:[#allocation2 + $0xf] sm:$0x1] %vm365_vm9, %v2510_v26  ;;  %4785 = vmatmul.mubr.msk.f32.vlgmr.msra.gmra.mrb[28].mxu1 %vm143_vm1, %v2530_v32  ;;  %4790 = vmatmul.mubr.msk.f32.vlgmr.msra.gmra.mrb[22].mxu0 %vm143_vm1, %v2531_v27 }
 0x869   :  { %4793 = vmatpush3.xpose.msk.msra.mxu1 %vm143_vm1, %v5864_v33  ;;  %4798 = vmatpush3.xpose.msk.msra.mxu0 %vm143_vm1, %v5868_v44  ;;  %v2533_v30 = vld [vmem:[#allocation2 + $0xc] sm:$0x3] }
 0x86a   :  { %4794 = vmatprep.mubr.msk.f32.mxu1 %vm5392_vm0, %v5393_v1  ;;  %4799 = vmatprep.mubr.msk.f32.mxu0 %vm5392_vm0, %v5393_v1 }
 0x86b   :  { %4802 = vmatprep.subr.mxu1 %v5393_v1  ;;  %v2532_v29 = vld [vmem:[#allocation2 + $0xa] sm:$0x3]  ;;  %4807 = vmatprep.subr.mxu0 %v5393_v1 }
 0x86c   :  { %4795 = vmatmul.mubr.msk.f32.vlgmr.msra.gmra.mrb[30].mxu1 %vm143_vm1, %v2532_v29  ;;  %4800 = vmatmul.mubr.msk.f32.vlgmr.msra.gmra.mrb[24].mxu0 %vm143_vm1, %v2533_v30 }
 0x86d   :  { %4803 = vmatpush3.xpose.msk.msra.mxu1 %vm143_vm1, %v5872_v52  ;;  %4804 = vmatprep.mubr.msk.f32.mxu1 %vm5392_vm0, %v5393_v1 }
 0x86e   :  { %4808 = vmatpush3.msra.mxu0 %v5846_v18  ;;  %4809 = vmatprep.mubr.msk.f32.mxu0 %vm5392_vm0, %v5393_v1 }
 0x86f   :  { %v2534_v31 = vld [vmem:[#allocation2 + $0xe] sm:$0x3]  ;;  %4812 = vmatprep.subr.mxu1 %v5393_v1  ;;  %4817 = vmatprep.subr.mxu0 %v5393_v1 }
 0x870   :  { %4805 = vmatmul.mubr.msk.f32.vlgmr.msra.gmra.mrb[32].mxu1 %vm143_vm1, %v2534_v31 }
 0x871   :  { %4813 = vmatpush3.msra.mxu1 %v5848_v19  ;;  %4814 = vmatprep.mubr.msk.f32.mxu1 %vm5392_vm0, %v5393_v1 }
 0x872   :  { %4822 = vmatprep.subr.mxu1 %v5393_v1 }
 0x933   :  { %v2607_v8 = vpop.f32.mrb[24].mxu1 }
 0x934   :  { %v4771_v38 = vpop.f32.mrb[25].mxu1  ;;  %v3143_v18 = vsel %vm1054_vm10, %v2607_v8, -inf }
 0x935   :  { %3144 = vmax.xlane.f32.xlu0 %v3143_v18 }
 0x937   :  { %v2683_v36 = vpop.f32.mrb[26].mxu1  ;;  %v2759_v39 = vpop.f32.mrb[20].mxu0 }
 0x938   :  { %v4776_v40 = vpop.f32.mrb[27].mxu1  ;;  %v4781_v41 = vpop.f32.mrb[21].mxu0  ;;  %v3149_v48 = vsel %vm1054_vm10, %v2759_v39, -inf  ;;  %v3146_v43 = vsel %vm1054_vm10, %v2683_v36, -inf }
 0x939   :  { %3150 = vmax.xlane.f32.xlu0 %v3149_v48  ;;  %3147 = vmax.xlane.f32.xlu1 %v3146_v43 }
 0x93b   :  { %v2835_v19 = vpop.f32.mrb[28].mxu1  ;;  %v2911_v45 = vpop.f32.mrb[22].mxu0 }
 0x93c   :  { %v4786_v46 = vpop.f32.mrb[29].mxu1  ;;  %v4791_v53 = vpop.f32.mrb[23].mxu0  ;;  %v3155_v55 = vsel %vm1054_vm10, %v2911_v45, -inf  ;;  %v3152_v9 = vsel %vm1054_vm10, %v2835_v19, -inf }
 0x93d   :  { %3156 = vmax.xlane.f32.xlu1 %v3155_v55  ;;  %3153 = vmax.xlane.f32.xlu0 %v3152_v9 }
 0x93f   :  { %v2987_v56 = vpop.f32.mrb[30].mxu1  ;;  %v3063_v11 = vpop.f32.mrb[24].mxu0 }
 0x940   :  { %v4796_v10 = vpop.f32.mrb[31].mxu1  ;;  %v4801_v57 = vpop.f32.mrb[25].mxu0  ;;  %v3161_v16 = vsel %vm1054_vm10, %v3063_v11, -inf  ;;  %v3158_v15 = vsel %vm1054_vm10, %v2987_v56, -inf }
 0x941   :  { %3162 = vmax.xlane.f32.xlu1 %v3161_v16  ;;  %3159 = vmax.xlane.f32.xlu0 %v3158_v15 }
 0x943   :  { %v3139_v63 = vpop.f32.mrb[32].mxu1 }
 0x944   :  { %v4806_v47 = vpop.f32.mrb[33].mxu1  ;;  %v3164_v51 = vsel %vm1054_vm10, %v3139_v63, -inf }
 0x945   :  { %3165 = vmax.xlane.f32.xlu0 %v3164_v51 }
 0x9c2   :  { %v3145_v5 = vpop.xlane.xlu0 %3144 }
 0x9c3   :  { %v3167_v54 = vsub.f32 %v2607_v8, %v3145_v5 }
 0x9c5   :  { %v3175_v58 = vmul.f32 1.442695, %v3167_v54 }
 0x9c6   :  { %v3151_v4 = vpop.xlane.xlu0 %3150  ;;  %v3148_v59 = vpop.xlane.xlu1 %3147 }
 0x9c7   :  { %5129 = vpow2.f32 %v3175_v58  ;;  %v3169_v60 = vsub.f32 %v2759_v39, %v3151_v4  ;;  %v3168_v24 = vsub.f32 %v2683_v36, %v3148_v59 }
 0x9c9   :  { %v3179_v62 = vmul.f32 1.442695, %v3169_v60  ;;  %v3177_v17 = vmul.f32 1.442695, %v3168_v24 }
 0x9ca   :  { %v3157_v2 = vpop.xlane.xlu1 %3156  ;;  %v3154_v3 = vpop.xlane.xlu0 %3153 }
 0x9cb   :  { %5131 = vpow2.f32 %v3179_v62  ;;  %v3171_v12 = vsub.f32 %v2911_v45, %v3157_v2  ;;  %v3170_v13 = vsub.f32 %v2835_v19, %v3154_v3  ;;  %v3816_v62 = vld [vmem:[#allocation12 + $0x40] sm:$0xff]  ;;  %v3818_v3 = vld [vmem:[#allocation12 + $0x50] sm:$0xff] }
 0x9cc   :  { %5133 = vpow2.f32 %v3177_v17  ;;  %v3817_v17 = vld [vmem:[#allocation12 + $0x48] sm:$0xff] }
 0x9cd   :  { %v3183_v14 = vmul.f32 1.442695, %v3171_v12  ;;  %v3181_v21 = vmul.f32 1.442695, %v3170_v13  ;;  %v5012_v2 = vpack.c.bf16 %v3817_v17, %v3816_v62  ;;  %v3819_v12 = vld [vmem:[#allocation12 + $0x58] sm:$0xff] }
 0x9ce   :  { %v3163_v22 = vpop.xlane.xlu1 %3162  ;;  %v3160_v34 = vpop.xlane.xlu0 %3159 }
 0x9cf   :  { %5135 = vpow2.f32 %v3183_v14  ;;  %v3173_v49 = vsub.f32 %v3063_v11, %v3163_v22  ;;  %v3172_v42 = vsub.f32 %v2987_v56, %v3160_v34 }
 0x9d0   :  { %5137 = vpow2.f32 %v3181_v21 }
 0x9d1   :  { %v5130_v23 = vpop.eup %5129  ;;  %v3187_v50 = vmul.f32 1.442695, %v3173_v49  ;;  %v3185_v7 = vmul.f32 1.442695, %v3172_v42 }
 0x9d2   :  { %v3166_v26 = vpop.xlane.xlu0 %3165  ;;  %v3191_v32 = vsel %vm1054_vm10, %v5130_v23, 0.0 }
 0x9d3   :  { %5139 = vpow2.f32 %v3187_v50  ;;  %v3174_v27 = vsub.f32 %v3139_v63, %v3166_v26  ;;  %3192 = vadd.xlane.f32.xlu1 %v3191_v32 }
 0x9d4   :  { %5141 = vpow2.f32 %v3185_v7 }
 0x9d5   :  { %v5132_v29 = vpop.eup %5131  ;;  %v3189_v30 = vmul.f32 1.442695, %v3174_v27 }
 0x9d6   :  { %v5134_v31 = vpop.eup %5133  ;;  %v3197_v8 = vsel %vm1054_vm10, %v5132_v29, 0.0 }
 0x9d7   :  { %5143 = vpow2.f32 %v3189_v30  ;;  %3198 = vadd.xlane.f32.xlu1 %v3197_v8  ;;  %v3194_v38 = vsel %vm1054_vm10, %v5134_v31, 0.0 }
 0x9d8   :  { %3195 = vadd.xlane.f32.xlu0 %v3194_v38 }
 0x9d9   :  { %v5136_v18 = vpop.eup %5135 }
 0x9da   :  { %v5138_v36 = vpop.eup %5137  ;;  %v3203_v39 = vsel %vm1054_vm10, %v5136_v18, 0.0 }
 0x9db   :  { %3204 = vadd.xlane.f32.xlu1 %v3203_v39  ;;  %v3200_v40 = vsel %vm1054_vm10, %v5138_v36, 0.0 }
 0x9dc   :  { %3201 = vadd.xlane.f32.xlu0 %v3200_v40 }
 0x9dd   :  { %v5140_v41 = vpop.eup %5139 }
 0x9de   :  { %v5142_v48 = vpop.eup %5141  ;;  %v3209_v43 = vsel %vm1054_vm10, %v5140_v41, 0.0 }
 0x9df   :  { %3210 = vadd.xlane.f32.xlu1 %v3209_v43  ;;  %v3206_v19 = vsel %vm1054_vm10, %v5142_v48, 0.0 }
 0x9e0   :  { %3207 = vadd.xlane.f32.xlu0 %v3206_v19 }
 0x9e1   :  { %v5144_v45 = vpop.eup %5143 }
 0x9e2   :  { %v3212_v46 = vsel %vm1054_vm10, %v5144_v45, 0.0 }
 0x9e4   :  { %3213 = vadd.xlane.f32.xlu0 %v3212_v46 }
 0xa60   :  { %v3193_v53 = vpop.xlane.xlu1 %3192 }
 0xa61   :  { %5145 = vrcp.f32 %v3193_v53 }
 0xa64   :  { %v3199_v55 = vpop.xlane.xlu1 %3198 }
 0xa65   :  { %5147 = vrcp.f32 %v3199_v55  ;;  %v3196_v9 = vpop.xlane.xlu0 %3195 }
 0xa66   :  { %5149 = vrcp.f32 %v3196_v9 }
 0xa68   :  { %v3205_v56 = vpop.xlane.xlu1 %3204 }
 0xa69   :  { %5151 = vrcp.f32 %v3205_v56  ;;  %v3202_v11 = vpop.xlane.xlu0 %3201 }
 0xa6a   :  { %5153 = vrcp.f32 %v3202_v11 }
 0xa6b   :  { %v5146_v10 = vpop.eup %5145 }
 0xa6c   :  { %v3223_v57 = vmul.f32 %v5146_v10, %v5130_v23  ;;  %v3211_v16 = vpop.xlane.xlu1 %3210 }
 0xa6d   :  { %5155 = vrcp.f32 %v3211_v16  ;;  %v3208_v15 = vpop.xlane.xlu0 %3207  ;;  %v4020_v16 = vld [vmem:[#allocation12 + $0x68] sm:$0xff] }
 0xa6e   :  { %5157 = vrcp.f32 %v3208_v15  ;;  %4810 = vmatmul.mubr.msk.f32.vlgmr.msra.gmra.mrb[26].mxu0 %vm1143_vm11, %v3223_v57  ;;  %v4019_v57 = vld [vmem:[#allocation12 + $0x60] sm:$0xff] }
 0xa6f   :  { %v5148_v63 = vpop.eup %5147  ;;  %4818 = vmatpush3.msra.mxu0 %v5850_v20  ;;  %4819 = vmatprep.mubr.msk.f32.mxu0 %vm5392_vm0, %v5393_v1 }
 0xa70   :  { %v5150_v47 = vpop.eup %5149  ;;  %v3225_v51 = vmul.f32 %v5148_v63, %v5132_v29  ;;  %4827 = vmatprep.subr.mxu0 %v5393_v1 }
 0xa71   :  { %v3224_v5 = vmul.f32 %v5150_v47, %v5134_v31  ;;  %v3214_v54 = vpop.xlane.xlu0 %3213 }
 0xa72   :  { %5159 = vrcp.f32 %v3214_v54  ;;  %4820 = vmatmul.mubr.msk.f32.vlgmr.msra.gmra.mrb[28].mxu0 %vm1143_vm11, %v3225_v51 }
 0xa73   :  { %v5152_v58 = vpop.eup %5151  ;;  %4815 = vmatmul.mubr.msk.f32.vlgmr.msra.gmra.mrb[34].mxu1 %vm1143_vm11, %v3224_v5  ;;  %4828 = vmatpush3.msra.mxu0 %v5860_v28 }
 0xa74   :  { %v5154_v4 = vpop.eup %5153  ;;  %v3227_v59 = vmul.f32 %v5152_v58, %v5136_v18  ;;  %4823 = vmatpush3.msra.mxu1 %v5856_v25  ;;  %4824 = vmatprep.mubr.msk.f32.mxu1 %vm5392_vm0, %v5393_v1 }
 0xa75   :  { %v3226_v20 = vmul.f32 %v5154_v4, %v5138_v36  ;;  %4829 = vmatprep.mubr.msk.f32.mxu0 %vm5392_vm0, %v5393_v1  ;;  %4832 = vmatprep.subr.mxu1 %v5393_v1  ;;  %v5042_v4 = vpack.c.bf16 %v4020_v16, %v4019_v57 }
 0xa76   :  { %4830 = vmatmul.mubr.msk.f32.vlgmr.msra.gmra.mrb[30].mxu0 %vm1143_vm11, %v3227_v59  ;;  %4837 = vmatprep.subr.mxu0 %v5393_v1  ;;  %v4021_v59 = vld [vmem:[#allocation12 + $0x70] sm:$0xff] }
 0xa77   :  { %v5156_v60 = vpop.eup %5155  ;;  %4825 = vmatmul.mubr.msk.f32.vlgmr.msra.gmra.mrb[36].mxu1 %vm1143_vm11, %v3226_v20  ;;  %4838 = vmatpush3.msra.mxu0 %v5868_v44  ;;  %v4022_v20 = vld [vmem:[#allocation12 + $0x78] sm:$0xff] }
 0xa78   :  { %v5158_v28 = vpop.eup %5157  ;;  %v3229_v25 = vmul.f32 %v5156_v60, %v5140_v41  ;;  %4833 = vmatpush3.msra.mxu1 %v5864_v33  ;;  %4834 = vmatprep.mubr.msk.f32.mxu1 %vm5392_vm0, %v5393_v1 }
 0xa79   :  { %v3228_v24 = vmul.f32 %v5158_v28, %v5142_v48  ;;  %4839 = vmatprep.mubr.msk.f32.mxu0 %vm5392_vm0, %v5393_v1  ;;  %4842 = vmatprep.subr.mxu1 %v5393_v1 }
 0xa7a   :  { %4840 = vmatmul.mubr.msk.f32.vlgmr.msra.gmra.mrb[32].mxu0 %vm1143_vm11, %v3229_v25  ;;  %5011 = vmatprep.subr.bf16.mxu0 %v5391_v0 }
 0xa7b   :  { %4835 = vmatmul.mubr.msk.f32.vlgmr.msra.gmra.mrb[38].mxu1 %vm1143_vm11, %v3228_v24  ;;  %4855 = vmatprep.mubr.msk.f32.mxu0 %vm5392_vm0, %v5393_v1  ;;  %v5045_v24 = vpack.c.bf16 %v4022_v20, %v4021_v59  ;;  %v4134_v59 = vld [vmem:[#allocation15 + $0x1b8] sm:$0xff]  ;;  %v3942_v20 = vld [vmem:[#allocation15 + $0x150] sm:$0xff] }
 0xa7c   :  { %v5160_v44 = vpop.eup %5159  ;;  %4843 = vmatpush3.msra.mxu1 %v5872_v52  ;;  %4844 = vmatprep.mubr.msk.f32.mxu1 %vm5392_vm0, %v5393_v1  ;;  %v5015_v52 = vpack.c.bf16 %v3819_v12, %v3818_v3 }
 0xa7d   :  { %v3230_v33 = vmul.f32 %v5160_v44, %v5144_v45  ;;  %5017 = vmatprep.subr.bf16.mxu1 %v5391_v0  ;;  %5013 = vmatpush3.bf16.msra.mxu0 %v5012_v2  ;;  %v4407_v44 = vld [vmem:[#allocation14 + $0x2] ss:$0 sm:$0xff]  ;;  %v4409_v2 = vld [vmem:[#allocation14 + $0x3] ss:$0 sm:$0xff] }
 0xa7e   :  { %5014 = vmatprep.subr.bf16.mxu0 %v5391_v0 }
 0xa7f   :  { %4845 = vmatmul.mubr.msk.f32.vlgmr.msra.gmra.mrb[40].mxu1 %vm1143_vm11, %v3230_v33 }
 0xa80   :  { %4890 = vmatprep.mubr.msk.f32.mxu1 %vm5392_vm0, %v5393_v1 }
 0xa81   :  { %5016 = vmatpush3.bf16.msra.mxu0 %v5015_v52 }
 0xa82   :  { %5041 = vmatprep.subr.bf16.mxu0 %v5391_v0 }
 0xb41   :  { %v6075_v13 = vpop.f32.mrb[26].mxu0 }
 0xb42   :  { %v4811_v14 = vpop.f32.mrb[27].mxu0  ;;  %v4031_v21 = vrot.slane %v6075_v13, 1 }
 0xb43   :  { %v3932_v14 = vld [vmem:[#allocation15 + $0x100] sm:$0xff] }
 0xb45   :  { %v6078_v22 = vpop.f32.mrb[28].mxu0 }
 0xb46   :  { %v6080_v34 = vpop.f32.mrb[34].mxu1  ;;  %v3838_v49 = vrot.slane %v6078_v22, 6  ;;  %v4033_v42 = vrot.slane %v6078_v22, 7  ;;  %v4821_v23 = vpop.f32.mrb[29].mxu0 }
 0xb47   :  { %v3836_v50 = vrot.slane %v6080_v34, 7  ;;  %v4032_v7 = vsel %vm221_vm2, %v6080_v34, %v4031_v21  ;;  %v4816_v26 = vpop.f32.mrb[35].mxu1  ;;  %v3933_v21 = vld [vmem:[#allocation15 + $0x108] sm:$0xff]  ;;  %v3935_v23 = vld [vmem:[#allocation15 + $0x118] sm:$0xff] }
 0xb48   :  { %v4034_v32 = vsel %vm223_vm3, %v4033_v42, %v4032_v7  ;;  %v5018_v42 = vpack.c.bf16 %v3933_v21, %v3932_v14  ;;  %v4128_v7 = vld [vmem:[#allocation15 + $0x188] sm:$0xff]  ;;  %v4139_v21 = vld [vmem:[#allocation15 + $0x1e0] sm:$0xff] }
 0xb49   :  { %v3837_v27 = vsel %vm221_vm2, %v3836_v50, %v6075_v13  ;;  %v6090_v29 = vpop.f32.mrb[30].mxu0  ;;  %v4127_v50 = vld [vmem:[#allocation15 + $0x180] sm:$0xff] }
 0xb4a   :  { %v3839_v30 = vsel %vm223_vm3, %v3838_v49, %v3837_v27  ;;  %v6093_v31 = vpop.f32.mrb[36].mxu1  ;;  %v3842_v8 = vrot.slane %v6090_v29, 4  ;;  %v4037_v38 = vrot.slane %v6090_v29, 5  ;;  %v4831_v18 = vpop.f32.mrb[31].mxu0  ;;  %v3934_v49 = vld [vmem:[#allocation15 + $0x110] sm:$0xff]  ;;  %v5048_v26 = vpack.c.bf16 %v4128_v7, %v4127_v50  ;;  %5019 = vmatpush3.bf16.msra.mxu1 %v5018_v42  ;;  %v4130_v27 = vld [vmem:[#allocation15 + $0x198] sm:$0xff] }
 0xb4b   :  { %v3840_v36 = vrot.slane %v6093_v31, 5  ;;  %v4035_v39 = vrot.slane %v6093_v31, 6  ;;  %v4826_v40 = vpop.f32.mrb[37].mxu1  ;;  %5020 = vmatprep.subr.bf16.mxu1 %v5391_v0  ;;  %v4131_v18 = vld [vmem:[#allocation15 + $0x1a0] sm:$0xff]  ;;  %v4142_v50 = vld [vmem:[#allocation15 + $0x1f8] sm:$0xff] }
 0xb4c   :  { %v3938_v40 = vld [vmem:[#allocation15 + $0x130] sm:$0xff] }
 0xb4d   :  { %v3841_v41 = vsel %vm225_vm4, %v3840_v36, %v3839_v30  ;;  %v4036_v48 = vsel %vm225_vm4, %v4035_v39, %v4034_v32  ;;  %v6101_v43 = vpop.f32.mrb[32].mxu0  ;;  %v4129_v32 = vld [vmem:[#allocation15 + $0x190] sm:$0xff]  ;;  %v3936_v30 = vld [vmem:[#allocation15 + $0x120] sm:$0xff]  ;;  %v4132_v36 = vld [vmem:[#allocation15 + $0x1a8] sm:$0xff] }
 0xb4e   :  { %v3843_v19 = vsel %vm227_vm5, %v3842_v8, %v3841_v41  ;;  %v4038_v45 = vsel %vm227_vm5, %v4037_v38, %v4036_v48  ;;  %v6105_v46 = vpop.f32.mrb[38].mxu1  ;;  %v4841_v53 = vpop.f32.mrb[33].mxu0  ;;  %v3846_v56 = vrot.slane %v6101_v43, 2  ;;  %v4041_v11 = vrot.slane %v6101_v43, 3  ;;  %v3937_v8 = vld [vmem:[#allocation15 + $0x128] sm:$0xff]  ;;  %v3939_v41 = vld [vmem:[#allocation15 + $0x138] sm:$0xff] }
 0xb4f   :  { %v3844_v55 = vrot.slane %v6105_v46, 3  ;;  %v4039_v9 = vrot.slane %v6105_v46, 4  ;;  %v4836_v10 = vpop.f32.mrb[39].mxu1  ;;  %v5051_v38 = vpack.c.bf16 %v4130_v27, %v4129_v32  ;;  %v5024_v39 = vpack.c.bf16 %v3937_v8, %v3936_v30  ;;  %v3941_v53 = vld [vmem:[#allocation15 + $0x148] sm:$0xff] }
 0xb50   :  { %v5054_v48 = vpack.c.bf16 %v4132_v36, %v4131_v18  ;;  %v4221_v36 = vmul.f32 0.6, %v6075_v13 }
 0xb51   :  { %v3845_v15 = vsel %vm229_vm6, %v3844_v55, %v3843_v19  ;;  %v4040_v51 = vsel %vm229_vm6, %v4039_v9, %v4038_v45  ;;  %v5027_v19 = vpack.c.bf16 %v3939_v41, %v3938_v40  ;;  %v3940_v45 = vld [vmem:[#allocation15 + $0x140] sm:$0xff]  ;;  %v4223_v40 = vmul.f32 0.6, %v6078_v22 }
 0xb52   :  { %v6112_v63 = vpop.f32.mrb[40].mxu1  ;;  %v3847_v47 = vsel %vm231_vm7, %v3846_v56, %v3845_v15  ;;  %v4042_v60 = vsel %vm231_vm7, %v4041_v11, %v4040_v51  ;;  %v5030_v55 = vpack.c.bf16 %v3941_v53, %v3940_v45  ;;  %v2222_v51 = vsel %vm143_vm1, %v5963_v6, 0.0  ;;  %v4135_v6 = vld [vmem:[#allocation15 + $0x1c0] sm:$0xff] }
 0xb53   :  { %v3848_v5 = vrot.slane %v6112_v63, 1  ;;  %v4043_v54 = vrot.slane %v6112_v63, 2  ;;  %v4846_v58 = vpop.f32.mrb[41].mxu1  ;;  %v4225_v41 = vmul.f32 0.6, %v6090_v29 }
 0xb54   :  { %v4228_v45 = vmul.f32 0.6, %v6112_v63  ;;  %v4213_v53 = vmul.f32 0.4, %v6075_v13 }
 0xb55   :  { %v3849_v28 = vsel %vm233_vm8, %v3848_v5, %v3847_v47  ;;  %v4044_v25 = vsel %vm233_vm8, %v4043_v54, %v4042_v60  ;;  %v2174_v47 = vld [vmem:[#allocation8] sm:$0xff] }
 0xb56   :  { %4856 = vmatmul.mubr.msk.f32.vlgmr.msra.gmra.mrb[34].mxu0 %vm143_vm1, %v3849_v28  ;;  %v2225_v5 = vmul.f32 %v2174_v47, %v5917_v61  ;;  %v3943_v28 = vld [vmem:[#allocation15 + $0x158] sm:$0xff]  ;;  %v4136_v61 = vld [vmem:[#allocation15 + $0x1c8] sm:$0xff]  ;;  %v4241_v47 = vrot.slane %v4225_v41, 1 }
 0xb57   :  { %5043 = vmatpush3.bf16.msra.mxu0 %v5042_v4  ;;  %4901 = vmatprep.mubr.msk.f32.mxu0 %vm5392_vm0, %v5393_v1  ;;  %v4133_v4 = vld [vmem:[#allocation15 + $0x1b0] sm:$0xff] }
 0xb58   :  { %5044 = vmatprep.subr.bf16.mxu0 %v5391_v0  ;;  %v2226_v58 = vsel %vm143_vm1, %v2225_v5, 0.0  ;;  %v5057_v60 = vpack.c.bf16 %v4134_v59, %v4133_v4 }
 0xb5b   :  { %5046 = vmatpush3.bf16.msra.mxu0 %v5045_v24  ;;  %v3944_v24 = vld [vmem:[#allocation15 + $0x160] sm:$0xff] }
 0xb5c   :  { %5047 = vmatprep.subr.bf16.mxu0 %v5391_v0 }
 0xb5e   :  { %4902 = vmatmul.mubr.msk.f32.vlgmr.msra.gmra.mrb[36].mxu0 %vm143_vm1, %v4044_v25  ;;  %v5033_v25 = vpack.c.bf16 %v3943_v28, %v3942_v20 }
 0xb5f   :  { %4936 = vmatprep.mubr.msk.f32.mxu0 %vm5392_vm0, %v5393_v1  ;;  %v5021_v1 = vpack.c.bf16 %v3935_v23, %v3934_v49  ;;  %5049 = vmatpush3.bf16.msra.mxu0 %v5048_v26  ;;  %v4140_v49 = vld [vmem:[#allocation15 + $0x1e8] sm:$0xff]  ;;  %v4141_v23 = vld [vmem:[#allocation15 + $0x1f0] sm:$0xff] }
 0xb60   :  { %5050 = vmatprep.subr.bf16.mxu0 %v5391_v0  ;;  %v5066_v42 = vpack.c.bf16 %v4140_v49, %v4139_v21  ;;  %v5069_v7 = vpack.c.bf16 %v4142_v50, %v4141_v23 }
 0xb61   :  { %5022 = vmatpush3.bf16.msra.mxu1 %v5021_v1 }
 0xb62   :  { %5023 = vmatprep.subr.bf16.mxu1 %v5391_v0 }
 0xb63   :  { %5052 = vmatpush3.bf16.msra.mxu0 %v5051_v38 }
 0xb64   :  { %5053 = vmatprep.subr.bf16.mxu0 %v5391_v0 }
 0xb65   :  { %5025 = vmatpush3.bf16.msra.mxu1 %v5024_v39  ;;  %v4222_v39 = vmul.f32 0.6, %v6080_v34 }
 0xb66   :  { %5026 = vmatprep.subr.bf16.mxu1 %v5391_v0 }
 0xb67   :  { %5055 = vmatpush3.bf16.msra.mxu0 %v5054_v48  ;;  %v4226_v48 = vmul.f32 0.6, %v6105_v46 }
 0xb68   :  { %5056 = vmatprep.subr.bf16.mxu0 %v5391_v0 }
 0xb69   :  { %5028 = vmatpush3.bf16.msra.mxu1 %v5027_v19  ;;  %v4227_v19 = vmul.f32 0.6, %v6101_v43 }
 0xb6a   :  { %5029 = vmatprep.subr.bf16.mxu1 %v5391_v0 }
 0xb6b   :  { %5058 = vmatpush3.bf16.msra.mxu0 %v5057_v60  ;;  %v4243_v5 = vrot.slane %v4227_v19, 1  ;;  %v4219_v60 = vmul.f32 0.4, %v6101_v43 }
 0xb6c   :  { %5059 = vmatprep.subr.bf16.mxu0 %v5391_v0 }
 0xb6d   :  { %5031 = vmatpush3.bf16.msra.mxu1 %v5030_v55  ;;  %v4237_v55 = vrot.slane %v4221_v36, 1 }
 0xb6e   :  { %5032 = vmatprep.subr.bf16.mxu1 %v5391_v0 }
 0xb6f   :  { %v4253_v20 = vadd.f32 %v4237_v55, %v4213_v53 }
 0xb71   :  { %5034 = vmatpush3.bf16.msra.mxu1 %v5033_v25 }
 0xb72   :  { %5035 = vmatprep.subr.bf16.mxu1 %v5391_v0 }
 0xc29   :  { %v3918_v33 = vpop.f32.mrb[34].mxu0 }
 0xc2a   :  { %v3919_v62 = vadd.f32 %v4407_v44, %v3918_v33  ;;  %v4857_v17 = vpop.f32.mrb[35].mxu0  ;;  %v5060_v44 = vpack.c.bf16 %v4136_v61, %v4135_v6  ;;  %v3945_v33 = vld [vmem:[#allocation15 + $0x168] sm:$0xff] }
 0xc2b   :  { %v4137_v17 = vld [vmem:[#allocation15 + $0x1d0] sm:$0xff] }
 0xc2c   :  { %3922 = vmax.xlane.f32.xlu1 %v3919_v62  ;;  %5061 = vmatpush3.bf16.msra.mxu0 %v5060_v44 }
 0xc2d   :  { %5062 = vmatprep.subr.bf16.mxu0 %v5391_v0 }
 0xc31   :  { %v4113_v3 = vpop.f32.mrb[36].mxu0 }
 0xc32   :  { %v4114_v12 = vadd.f32 %v4409_v2, %v4113_v3  ;;  %v4903_v52 = vpop.f32.mrb[37].mxu0  ;;  %v4138_v2 = vld [vmem:[#allocation15 + $0x1d8] sm:$0xff]  ;;  %v3946_v3 = vld [vmem:[#allocation15 + $0x170] sm:$0xff] }
 0xc33   :  { %v3947_v52 = vld [vmem:[#allocation15 + $0x178] sm:$0xff] }
 0xc34   :  { %4117 = vmax.xlane.f32.xlu0 %v4114_v12  ;;  %v5039_v14 = vpack.c.bf16 %v3947_v52, %v3946_v3 }
 0xcb9   :  { %v3923_v9 = vpop.xlane.xlu1 %3922 }
 0xcba   :  { %v3924_v56 = vsub.f32 %v3919_v62, %v3923_v9  ;;  %v5036_v62 = vpack.c.bf16 %v3945_v33, %v3944_v24  ;;  %v4214_v9 = vmul.f32 0.4, %v6080_v34  ;;  %v4218_v34 = vmul.f32 0.4, %v6105_v46 }
 0xcbb   :  { %v4259_v24 = vadd.f32 %v4243_v5, %v4219_v60 }
 0xcbc   :  { %v3925_v11 = vmul.f32 1.442695, %v3924_v56  ;;  %5037 = vmatpush3.bf16.msra.mxu1 %v5036_v62  ;;  %v4238_v56 = vrot.slane %v4222_v39, 1 }
 0xcbd   :  { %5038 = vmatprep.subr.bf16.mxu1 %v5391_v0 }
 0xcbe   :  { %5161 = vpow2.f32 %v3925_v11  ;;  %v4215_v11 = vmul.f32 0.4, %v6078_v22  ;;  %v4220_v22 = vmul.f32 0.4, %v6112_v63  ;;  %v4254_v28 = vadd.f32 %v4238_v56, %v4214_v9 }
 0xcc0   :  { %5040 = vmatpush3.bf16.msra.mxu1 %v5039_v14 }
 0xcc1   :  { %v4118_v10 = vpop.xlane.xlu0 %4117 }
 0xcc2   :  { %v4119_v57 = vsub.f32 %v4114_v12, %v4118_v10  ;;  %v5063_v12 = vpack.c.bf16 %v4138_v2, %v4137_v17  ;;  %v4239_v10 = vrot.slane %v4223_v40, 1  ;;  %v4264_v40 = vld [vmem:[#allocation9] sm:$0xff] }
 0xcc4   :  { %v4120_v16 = vmul.f32 1.442695, %v4119_v57  ;;  %5064 = vmatpush3.bf16.msra.mxu0 %v5063_v12  ;;  %v4216_v57 = vmul.f32 0.4, %v6093_v31 }
 0xcc5   :  { %5065 = vmatprep.subr.bf16.mxu0 %v5391_v0 }
 0xcc6   :  { %5163 = vpow2.f32 %v4120_v16 }
 0xcc8   :  { %v5162_v15 = vpop.eup %5161  ;;  %5067 = vmatpush3.bf16.msra.mxu0 %v5066_v42 }
 0xcc9   :  { %3927 = vadd.xlane.f32.xlu1 %v5162_v15  ;;  %5068 = vmatprep.subr.bf16.mxu0 %v5391_v0  ;;  %v4224_v0 = vmul.f32 0.6, %v6093_v31  ;;  %v4255_v31 = vadd.f32 %v4239_v10, %v4215_v11 }
 0xccb   :  { %v4240_v16 = vrot.slane %v4224_v0, 1 }
 0xccc   :  { %5070 = vmatpush3.bf16.msra.mxu0 %v5069_v7 }
 0xccd   :  { %2223 = vadd.xlane.f32.xlu1 %v2222_v51  ;;  %v4242_v51 = vrot.slane %v4226_v48, 1  ;;  %v4256_v25 = vadd.f32 %v4240_v16, %v4216_v57 }
 0xccf   :  { %v4258_v61 = vadd.f32 %v4242_v51, %v4218_v34 }
 0xcd0   :  { %v5164_v54 = vpop.eup %5163 }
 0xcd1   :  { %4122 = vadd.xlane.f32.xlu0 %v5164_v54  ;;  %2227 = vadd.xlane.f32.xlu1 %v2226_v58 }
 0xd56   :  { %v3928_v26 = vpop.xlane.xlu1 %3927 }
 0xd57   :  { %5165 = vrcp.f32 %v3928_v26 }
 0xd5a   :  { %v2224_v53 = vpop.xlane.xlu1 %2223 }
 0xd5b   :  { %v2229_v55 = vsub.f32 1.0, %v2224_v53 }
 0xd5d   :  { %v2230_v9 = vmul.f32 3.0, %v2229_v55 }
 0xd5e   :  { %v4123_v32 = vpop.xlane.xlu0 %4122  ;;  %v2228_v56 = vpop.xlane.xlu1 %2227 }
 0xd5f   :  { %5167 = vrcp.f32 %v4123_v32  ;;  %v2231_v57 = vadd.f32 %v2230_v9, %v2228_v56 }
 0xd61   :  { %v5166_v1 = vpop.eup %5165  ;;  %v2232_v5 = vmax.f32 %v2231_v57, 0.0 }
 0xd62   :  { %v3930_v27 = vmul.f32 %v5166_v1, %v5162_v15  ;;  %v4217_v15 = vmul.f32 0.4, %v6090_v29 }
 0xd64   :  { %4891 = vmatmul.mubr.f32.vlgmr.msra.gmra.mrb[42].mxu1 %v3930_v27  ;;  %v4257_v29 = vadd.f32 %v4241_v47, %v4217_v15  ;;  %v4326_v15 = vand.u32 127, %v312_v35 }
 0xd69   :  { %v5168_v30 = vpop.eup %5167 }
 0xd6a   :  { %v4125_v8 = vmul.f32 %v5168_v30, %v5164_v54  ;;  %v4244_v54 = vrot.slane %v4228_v45, 1 }
 0xd6c   :  { %4937 = vmatmul.mubr.f32.vlgmr.msra.gmra.mrb[38].mxu0 %v4125_v8  ;;  %v4260_v44 = vadd.f32 %v4244_v54, %v4220_v22  ;;  %v4329_v54 = vsub.s32 %v4326_v15, %v5624_v37 }
 0xe37   :  { %v4014_v38 = vpop.f32.mrb[42].mxu1 }
 0xe38   :  { %v4892_v18 = vpop.f32.mrb[43].mxu1  ;;  %v4261_v4 = vmul.f32 0.4, %v4014_v38 }
 0xe3f   :  { %v4209_v58 = vpop.f32.mrb[38].mxu0 }
 0xe40   :  { %v4262_v59 = vmul.f32 0.6, %v4209_v58  ;;  %v4938_v13 = vpop.f32.mrb[39].mxu0 }
 0xe42   :  { %v4263_v6 = vadd.f32 %v4262_v59, %v4261_v4 }
 0xe44   :  { %v4266_v33 = vrot.slane %v4263_v6, 1  ;;  %v4267_v62 = vrot.slane %v4263_v6, 2  ;;  %v4268_v17 = vrot.slane %v4263_v6, 3  ;;  %v4269_v2 = vrot.slane %v4263_v6, 4 }
 0xe45   :  { %v4270_v3 = vrot.slane %v4263_v6, 5  ;;  %v4271_v12 = vrot.slane %v4263_v6, 6  ;;  %v4272_v52 = vrot.slane %v4263_v6, 7  ;;  %v4281_v46 = vmul.f32 %v4263_v6, %v4253_v20 }
 0xe46   :  { %v4282_v14 = vmul.f32 %v4266_v33, %v4254_v28  ;;  %v4283_v43 = vmul.f32 %v4267_v62, %v4255_v31  ;;  %v4284_v21 = vmul.f32 %v4268_v17, %v4256_v25  ;;  %v4285_v63 = vmul.f32 %v4269_v2, %v4257_v29 }
 0xe47   :  { %v4286_v49 = vmul.f32 %v4270_v3, %v4258_v61  ;;  %v4287_v42 = vmul.f32 %v4271_v12, %v4259_v24  ;;  %v4288_v23 = vmul.f32 %v4272_v52, %v4260_v44  ;;  %v4315_v19 = vmul.f32 %v4264_v40, %v4263_v6 }
 0xe48   :  { %v4297_v50 = vrot.slane %v4282_v14, 7  ;;  %v4299_v7 = vrot.slane %v4283_v43, 6  ;;  %v4301_v32 = vrot.slane %v4284_v21, 5  ;;  %v4303_v27 = vrot.slane %v4285_v63, 4 }
 0xe49   :  { %v4305_v8 = vrot.slane %v4286_v49, 3  ;;  %v4307_v18 = vrot.slane %v4287_v42, 2  ;;  %v4309_v39 = vrot.slane %v4288_v23, 1  ;;  %v4316_v45 = vsel %vm143_vm1, %v4315_v19, 0.0 }
 0xe4a   :  { %v4298_v26 = vsel %vm221_vm2, %v4297_v50, %v4281_v46 }
 0xe4b   :  { %v4300_v1 = vsel %vm223_vm3, %v4299_v7, %v4298_v26 }
 0xe4c   :  { %v4302_v30 = vsel %vm225_vm4, %v4301_v32, %v4300_v1 }
 0xe4d   :  { %v4304_v38 = vsel %vm227_vm5, %v4303_v27, %v4302_v30 }
 0xe4e   :  { %v4306_v36 = vsel %vm229_vm6, %v4305_v8, %v4304_v38 }
 0xe4f   :  { %v4308_v0 = vsel %vm231_vm7, %v4307_v18, %v4306_v36 }
 0xe50   :  { %v4310_v41 = vsel %vm233_vm8, %v4309_v39, %v4308_v0 }
 0xe51   :  { %v4312_v48 = vsel %vm143_vm1, %v4310_v41, 0.0 }
 0xe52   :  { %4313 = vadd.xlane.f32.xlu0 %v4312_v48 }
 0xe56   :  { %4317 = vadd.xlane.f32.xlu0 %v4316_v45 }
 0xedf   :  { %v4314_v11 = vpop.xlane.xlu0 %4313 }
 0xee0   :  { %v4319_v10 = vsub.f32 1.0, %v4314_v11 }
 0xee2   :  { %v4320_v16 = vmul.f32 3.0, %v4319_v10 }
 0xee3   :  { %v4318_v47 = vpop.xlane.xlu0 %4317 }
 0xee4   :  { %v4321_v51 = vadd.f32 %v4320_v16, %v4318_v47 }
 0xee6   :  { %v4322_v58 = vmax.f32 %v4321_v51, 0.0 }
 0xee8   :  { %v4323_v4 = vadd.f32 %v4322_v58, %v2232_v5 }
 0xeea   :  { %v4330_v59 = vrot.slane %v4323_v4, %v4329_v54 }
 0xeec   :  { %4333 = vst.msk [vmem:[#allocation17] sm:$0x1] %vm4332_vm12, %v4330_v59 }
 0xeed   :  { %5356 = shalt.err (!%p5353_p12)
}
 0xeee   :  { %s5357_s13 = scalar_lea.hbm %s6194_s8, 16 }
 0xeef   :  { %p5358_p13 = scmp.ne.s32.totalorder %s6194_s8, %s5357_s13  ;;  %p5361_p0 = scmp.lt.u32.totalorder %s5357_s13, %s6194_s8 }
 0xef1   :  { %p5363_p1 = pnand %p5361_p0, %p5358_p13 }
 0xef3   :  { %5366 = shalt.err (!%p5363_p1)
}
 0xef4   :  { %4343 = dma.vmem_to_hbm [thread:$0]  %s4341_s18, 16, %s6194_s8, [#allocation5]  }
 0xef5   :  { %5377 = dma.done.wait [#allocation5], 16  }
 0xef6   :  { %5378 = vsyncadd [#allocation5], 4294967280 }
 0xef7   :  { %4347 = vsyncpa [#allocation4], 1 }
 0xef8   :  { %4348 = vsyncpa [#allocation7], 1 }
 0xef9   :  { %4349 = vsyncpa [#allocation10], 1 }
 0xefa   :  { %4350 = vsyncpa [#allocation13], 1 }
 0xefb   :  { %4351 = vsyncpa [#allocation16], 1 }
 0xefc   :  { %4352 = vsyncpa [#allocation5], 1 }

</bundles_post_ra>
